<compile_context>
chip_gen: v7x
topology: tpu7x:2x2x1
jax: 0.10.0
libtpu: 0.0.40
codegen_flags: <defaults>
</compile_context>

<pallas_src>
import functools

import jax
import jax.numpy as jnp
import numpy as np
from jax.experimental import pallas as pl
from jax.experimental.pallas import tpu as pltpu

NEG_SLOPE = 0.1  # LeakyReLU(negative_slope=0.1)
LANE = 128


def _round_up(v, m):
    return (v + m - 1) // m * m


def _cdiv(a, b):
    return (a + b - 1) // b


def _vmem_capacity_bytes():
    try:
        return int(pltpu.get_tpu_info().vmem_capacity_bytes)
    except Exception:
        return 64 * 1024 * 1024  # conservative fallback (v7x per-core VMEM)


# ----------------------------------------------------------------------------
# Fused kernel: conv1 -> conv2(3x3) -> conv3 (+ projection skip) -> LeakyReLU
# ----------------------------------------------------------------------------
def _bottleneck_kernel(*refs, stride, to, wo, wpl, halo, use_projection,
                       neg_slope):
    s = stride
    ss = s * s
    if halo > 0:
        xa_ref, xb_ref, w1_ref, w2_ref, w3_ref, o_ref, c1_ref = refs
    else:
        xa_ref, w1_ref, w2_ref, w3_ref, o_ref, c1_ref = refs
        xb_ref = None

    cin_p = xa_ref.shape[-1]
    cout_p = w1_ref.shape[-1]
    c4_p = o_ref.shape[-1]
    M = to * wpl                       # flat rows of one tile (full padded width)
    Mh = halo * wpl
    R = c1_ref.shape[1]

    def act(v):
        return jnp.where(v >= 0, v, neg_slope * v)

    w1 = w1_ref[...]

    # conv1 (1x1) + LeakyReLU: all parity planes of the main rows in ONE matmul,
    # the halo rows in a second small matmul; both land in the contiguous c1
    # scratch so every conv2 tap below is a flat contiguous slab.
    xa = xa_ref[0].reshape(ss * M, cin_p)
    c1a = act(jnp.dot(xa, w1, preferred_element_type=jnp.float32)
              ).astype(jnp.bfloat16)
    for p in range(ss):
        c1_ref[p, :M, :] = c1a[p * M:(p + 1) * M]
    if halo > 0:
        xb = xb_ref[0].reshape(ss * Mh, cin_p)
        c1b = act(jnp.dot(xb, w1, preferred_element_type=jnp.float32)
                  ).astype(jnp.bfloat16)
        for p in range(ss):
            c1_ref[p, M:M + Mh, :] = c1b[p * Mh:(p + 1) * Mh]
        # Shifted tap slabs over-read a few rows past (to+halo)*wpl; that data
        # only lands in discarded output columns, but keep it finite/zero.
        c1_ref[:, M + Mh:, :] = jnp.zeros((ss, R - M - Mh, cout_p), jnp.bfloat16)

    # conv2 (3x3, stride s, pad 1): the nine taps fused into one MXU matmul with
    # K = 9*cout_p.  Each tap is a contiguous flat slab of c1 at a static offset.
    slabs = []
    for dh in range(3):
        for dw in range(3):
            p = (dh % s) * s + (dw % s)
            off = (dh // s) * wpl + (dw // s)
            slabs.append(c1_ref[p, off:off + M, :])
    op2 = jnp.concatenate(slabs, axis=-1)                      # (M, 9*cout_p)
    c2 = act(jnp.dot(op2, w2_ref[...], preferred_element_type=jnp.float32)
             ).astype(jnp.bfloat16)                            # (M, cout_p)

    # Skip operand: x sampled at the conv output centres (stride s, no padding)
    # == plane p0 shifted by o0 in the space-to-depth layout.
    o0 = 1 // s
    p0 = (1 % s) * s + (1 % s)
    off_s = o0 * wpl + o0
    if off_s == 0:
        xs = xa_ref[0, p0].reshape(M, cin_p)
    else:                               # stride 1: slab crosses into the halo
        xa_flat = xa_ref[0, p0].reshape(M, cin_p)
        xb_flat = xb_ref[0, p0].reshape(Mh, cin_p)
        xs = jnp.concatenate([xa_flat[off_s:, :], xb_flat[:off_s, :]], axis=0)

    # conv3 (1x1) with the projection skip fused along K, then residual + act.
    if use_projection:
        op3 = jnp.concatenate([c2, xs], axis=-1)               # (M, cout_p+cin_p)
        y = jnp.dot(op3, w3_ref[...], preferred_element_type=jnp.float32)
    else:
        # identity skip (only shape-valid when padded Cin == padded 4*Cout,
        # mirroring the PyTorch module's residual add)
        y = jnp.dot(c2, w3_ref[...], preferred_element_type=jnp.float32)
        y = y + xs.astype(jnp.float32)

    y = act(y)
    o_ref[0] = y.reshape(to, wpl, c4_p)[:, :wo, :].astype(o_ref.dtype)


# ----------------------------------------------------------------------------
# Wrapper: layout plumbing (NCHW<->NHWC, channel pad, space-to-depth) + call
# ----------------------------------------------------------------------------
@functools.partial(jax.jit, static_argnums=(5,))
def resnet_bottleneck_block(x_nchw, w1, w2, w3, wp, stride):
    """Forward pass.  Weights are in PyTorch OIHW layout; x is NCHW."""
    N, Cin, H, W = x_nchw.shape
    Cout = w1.shape[0]
    C4 = w3.shape[0]
    s = int(stride)
    ss = s * s
    halo = 2 // s                   # extra plane-rows a row tile needs below it

    Ho = (H - 1) // s + 1
    Wo = (W - 1) // s + 1
    use_projection = (H, W) != (Ho, Wo) or Cin != Cout

    cin_p = _round_up(Cin, LANE)
    cout_p = _round_up(Cout, LANE)
    c4_p = _round_up(C4, LANE)
    bf = jnp.bfloat16
    out_dt = x_nchw.dtype

    # Padded plane width (space-to-depth column count); lane/sublane friendly.
    wpl = _round_up(max(_cdiv(W + 2, s), Wo + halo), 8)

    # ---- VMEM-budget-driven row-tile height ---------------------------------
    vmem_cap = _vmem_capacity_bytes()
    vmem_limit = min(int(vmem_cap * 0.9), 100 * 2**20)
    budget = int(vmem_limit * 0.55)

    wt_bytes = (cin_p * cout_p + 9 * cout_p * cout_p
                + (cout_p + (cin_p if use_projection else 0)) * c4_p) * 2

    def vmem_bytes(t):
        m = t * wpl
        xa = ss * t * wpl * cin_p * 2
        xb = ss * halo * wpl * cin_p * 2
        c1 = ss * ((t + halo) * wpl + 8) * cout_p * 2
        op2 = m * 9 * cout_p * 2
        c2v = m * cout_p * 6
        op3 = m * (cout_p + cin_p) * 2
        yv = m * c4_p * 4
        outb = t * Wo * c4_p * out_dt.itemsize
        return int(1.25 * (2 * (xa + xb + outb) + 2 * wt_bytes
                           + c1 + op2 + c2v + op3 + yv))

    base = max(halo, 1)             # keep `to` a multiple of the halo depth
    hi = _round_up(Ho, base)
    rows_cap = 2048                 # target matmul M = to*wpl around 0.5-2k rows
    t = hi
    while t > base and (t * wpl > rows_cap or vmem_bytes(t) > budget):
        t -= base
    to = max(t, base)
    n_tiles = _cdiv(Ho, to)
    if N * n_tiles < 2 and hi >= 2 * base:
        n_tiles = 2                 # give the second TensorCore (v7x) work
    to = _round_up(_cdiv(Ho, n_tiles), base)    # balance tiles (less tail waste)
    n_tiles = max(_cdiv(Ho, to), 1)
    Ho_pad = n_tiles * to

    # Padded / space-to-depth input geometry.
    hpl = max(_cdiv(H + 2, s), Ho_pad + halo)
    hp2, wp2 = hpl * s, wpl * s

    # Weights -> MXU (K, N) layouts, zero-padded to lane multiples, bf16.
    w1m = jnp.zeros((cin_p, cout_p), bf).at[:Cin, :Cout].set(
        w1[:, :, 0, 0].T.astype(bf))
    w2t = jnp.transpose(w2, (2, 3, 1, 0)).reshape(9, Cout, Cout).astype(bf)
    w2m = jnp.zeros((9, cout_p, cout_p), bf).at[:, :Cout, :Cout].set(
        w2t).reshape(9 * cout_p, cout_p)                 # nine taps stacked on K
    w3m = jnp.zeros((cout_p, c4_p), bf).at[:Cout, :C4].set(
        w3[:, :, 0, 0].T.astype(bf))
    if use_projection:
        wpm = jnp.zeros((cin_p, c4_p), bf).at[:Cin, :C4].set(
            wp[:, :, 0, 0].T.astype(bf))
        w3f = jnp.concatenate([w3m, wpm], axis=0)        # conv3 & skip fused on K
    else:
        w3f = w3m

    # NHWC + zero pad (conv2 padding + tile/lane rounding) + space-to-depth so
    # every 3x3 tap and the strided skip sampling are contiguous flat slabs.
    xh = jnp.transpose(x_nchw, (0, 2, 3, 1)).astype(bf)
    xh = jnp.pad(xh, ((0, 0), (1, hp2 - H - 1), (1, wp2 - W - 1),
                      (0, cin_p - Cin)))
    x5 = xh.reshape(N, hpl, s, wpl, s, cin_p)
    x5 = jnp.transpose(x5, (0, 2, 4, 1, 3, 5)).reshape(N, ss, hpl, wpl, cin_p)

    kern = functools.partial(
        _bottleneck_kernel, stride=s, to=to, wo=Wo, wpl=wpl, halo=halo,
        use_projection=use_projection, neg_slope=NEG_SLOPE)

    in_specs = [pl.BlockSpec((1, ss, to, wpl, cin_p),
                             lambda b, i: (b, 0, i, 0, 0))]
    inputs = [x5]
    if halo > 0:
        step = to // halo           # `to` is a multiple of `halo` by construction
        in_specs.append(pl.BlockSpec((1, ss, halo, wpl, cin_p),
                                     lambda b, i: (b, 0, (i + 1) * step, 0, 0)))
        inputs.append(x5)
    in_specs += [
        pl.BlockSpec((cin_p, cout_p), lambda b, i: (0, 0)),
        pl.BlockSpec((9 * cout_p, cout_p), lambda b, i: (0, 0)),
        pl.BlockSpec(w3f.shape, lambda b, i: (0, 0)),
    ]
    inputs += [w1m, w2m, w3f]

    R = (to + halo) * wpl + (8 if halo > 0 else 0)

    out = pl.pallas_call(
        kern,
        out_shape=jax.ShapeDtypeStruct((N, Ho_pad, Wo, c4_p), out_dt),
        grid_spec=pltpu.PrefetchScalarGridSpec(
            num_scalar_prefetch=0,
            grid=(N, n_tiles),
            in_specs=in_specs,
            out_specs=pl.BlockSpec((1, to, Wo, c4_p), lambda b, i: (b, i, 0, 0)),
            scratch_shapes=[pltpu.VMEM((ss, R, cout_p), bf)],
        ),
        compiler_params=pltpu.CompilerParams(
            dimension_semantics=("parallel", "parallel"),
            vmem_limit_bytes=vmem_limit),
    )(*inputs)

    if (Ho_pad, c4_p) != (Ho, C4):
        out = out[:, :Ho, :, :C4]                        # drop row/channel pad
    return jnp.transpose(out, (0, 3, 1, 2))              # back to NCHW


# ----------------------------------------------------------------------------
# Pure-JAX reference (lax conv, f32) for correctness check
# ----------------------------------------------------------------------------
def ref_forward(x, w1, w2, w3, wp, stride):
    act = lambda v: jnp.where(v >= 0, v, NEG_SLOPE * v)
    dn = ('NCHW', 'OIHW', 'NCHW')
    conv = jax.lax.conv_general_dilated
    c1 = act(conv(x, w1, (1, 1), 'VALID', dimension_numbers=dn))
    c2 = act(conv(c1, w2, (stride, stride), ((1, 1), (1, 1)),
                  dimension_numbers=dn))
    c3 = conv(c2, w3, (1, 1), 'VALID', dimension_numbers=dn)
    if x.shape[2:4] != c2.shape[2:4] or x.shape[1] != c2.shape[1]:
        X = conv(x, wp, (stride, stride), 'VALID', dimension_numbers=dn)
    else:
        X = x
    return act(c3 + X)


# ----------------------------------------------------------------------------
if __name__ == "__main__":
    key = jax.random.PRNGKey(0)
    k_x, k1, k2, k3, kp = jax.random.split(key, 5)

    # small, module-consistent shapes
    Nb, Cin, H, W = 2, 4, 16, 16
    Cout = 8
    stride = 2

    x = jax.random.normal(k_x, (Nb, Cin, H, W), dtype=jnp.float32)
    # deterministic synthetic weights (PyTorch OIHW layout)
    w1 = 0.1 * jax.random.normal(k1, (Cout, Cin, 1, 1), dtype=jnp.float32)
    w2 = 0.1 * jax.random.normal(k2, (Cout, Cout, 3, 3), dtype=jnp.float32)
    w3 = 0.1 * jax.random.normal(k3, (4 * Cout, Cout, 1, 1), dtype=jnp.float32)
    wp = 0.1 * jax.random.normal(kp, (4 * Cout, Cin, 1, 1), dtype=jnp.float32)

    out = jax.block_until_ready(resnet_bottleneck_block(x, w1, w2, w3, wp, stride))
    ref = jax.block_until_ready(ref_forward(x, w1, w2, w3, wp, stride))
    assert out.shape == (Nb, 4 * Cout, H // stride, W // stride), out.shape
    # bf16 matmul operands with f32 accumulation -> looser tolerance than pure f32
    np.testing.assert_allclose(np.asarray(out), np.asarray(ref),
                               rtol=3e-2, atol=3e-2)

    # stride-1 config exercises the two-row halo, multi-tile grid and the
    # boundary-crossing skip slab path.
    x1 = jax.random.normal(k_x, (1, Cin, 8, 8), dtype=jnp.float32)
    out1 = jax.block_until_ready(resnet_bottleneck_block(x1, w1, w2, w3, wp, 1))
    ref1 = jax.block_until_ready(ref_forward(x1, w1, w2, w3, wp, 1))
    assert out1.shape == (1, 4 * Cout, 8, 8), out1.shape
    np.testing.assert_allclose(np.asarray(out1), np.asarray(ref1),
                               rtol=3e-2, atol=3e-2)

    print("KERNEL_OK")
</pallas_src>

<mosaic_0001>
module attributes {stable_mosaic.version = 11 : i64} {
  func.func @_bottleneck_kernel(%arg0: i32, %arg1: i32, %arg2: memref<1x4x8x16x128xbf16, #tpu.memory_space<vmem>>, %arg3: memref<1x4x1x16x128xbf16, #tpu.memory_space<vmem>>, %arg4: memref<128x128xbf16, #tpu.memory_space<vmem>>, %arg5: memref<1152x128xbf16, #tpu.memory_space<vmem>>, %arg6: memref<256x128xbf16, #tpu.memory_space<vmem>>, %arg7: memref<1x8x8x128xf32, #tpu.memory_space<vmem>>, %arg8: memref<4x152x128xbf16, #tpu.memory_space<vmem>>) attributes {dimension_semantics = [#tpu.dimension_semantics<parallel>, #tpu.dimension_semantics<parallel>], iteration_bounds = array<i64: 2, 1>, scalar_prefetch = 0 : i64, scratch_operands = 1 : i64, tpu.core_type = #tpu.core_type<tc>, window_params = [{transform_indices = @transform_0, window_bounds = array<i64: 1, 4, 8, 16, 128>}, {transform_indices = @transform_1, window_bounds = array<i64: 1, 4, 1, 16, 128>}, {pipeline_mode = #tpu.pipeline_mode<synchronous>, transform_indices = @transform_2, window_bounds = array<i64: 128, 128>}, {pipeline_mode = #tpu.pipeline_mode<synchronous>, transform_indices = @transform_3, window_bounds = array<i64: 1152, 128>}, {pipeline_mode = #tpu.pipeline_mode<synchronous>, transform_indices = @transform_4, window_bounds = array<i64: 256, 128>}, {transform_indices = @transform_5, window_bounds = array<i64: 1, 8, 8, 128>}]} {
    %c0 = arith.constant 0 : index
    %c0_0 = arith.constant 0 : index
    %0 = vector.load %arg4[%c0, %c0_0] : memref<128x128xbf16, #tpu.memory_space<vmem>>, vector<128x128xbf16>
    %c0_1 = arith.constant 0 : index
    %c0_2 = arith.constant 0 : index
    %c0_3 = arith.constant 0 : index
    %c0_4 = arith.constant 0 : index
    %c0_5 = arith.constant 0 : index
    %1 = vector.load %arg2[%c0_1, %c0_2, %c0_3, %c0_4, %c0_5] : memref<1x4x8x16x128xbf16, #tpu.memory_space<vmem>>, vector<1x4x8x16x128xbf16>
    %2 = vector.shape_cast %1 : vector<1x4x8x16x128xbf16> to vector<4x8x16x128xbf16>
    %3 = vector.shape_cast %2 : vector<4x8x16x128xbf16> to vector<512x128xbf16>
    %cst = arith.constant dense<0.000000e+00> : vector<512x128xf32>
    %4 = tpu.matmul %3, %0, %cst {dimension_numbers = #tpu.dot_dimension_numbers<[1], [0], [0], [1], [0, 0, 1, 1], [], []>} : vector<512x128xbf16>, vector<128x128xbf16>, vector<512x128xf32> -> vector<512x128xf32>
    %cst_6 = arith.constant 0.000000e+00 : f32
    %5 = vector.broadcast %cst_6 : f32 to vector<512x128xf32>
    %6 = arith.cmpf oge, %4, %5 : vector<512x128xf32>
    %cst_7 = arith.constant 1.000000e-01 : f32
    %7 = vector.broadcast %cst_7 : f32 to vector<512x128xf32>
    %8 = arith.mulf %7, %4 : vector<512x128xf32>
    %9 = arith.select %6, %4, %8 : vector<512x128xi1>, vector<512x128xf32>
    %10 = arith.truncf %9 : vector<512x128xf32> to vector<512x128xbf16>
    %11 = vector.extract_strided_slice %10 {offsets = [0, 0], sizes = [128, 128], strides = [1, 1]} : vector<512x128xbf16> to vector<128x128xbf16>
    %c0_8 = arith.constant 0 : index
    %c0_9 = arith.constant 0 : index
    %c0_10 = arith.constant 0 : index
    %12 = vector.load %arg8[%c0_8, %c0_9, %c0_10] : memref<4x152x128xbf16, #tpu.memory_space<vmem>>, vector<1x128x128xbf16>
    %13 = vector.shape_cast %12 : vector<1x128x128xbf16> to vector<128x128xbf16>
    %14 = vector.shape_cast %11 : vector<128x128xbf16> to vector<1x128x128xbf16>
    tpu.vector_store %arg8[%c0_8, %c0_9, %c0_10], %14 {strides = array<i32>} : memref<4x152x128xbf16, #tpu.memory_space<vmem>>, vector<1x128x128xbf16>,
    %15 = vector.extract_strided_slice %10 {offsets = [128, 0], sizes = [128, 128], strides = [1, 1]} : vector<512x128xbf16> to vector<128x128xbf16>
    %c1 = arith.constant 1 : index
    %c0_11 = arith.constant 0 : index
    %c0_12 = arith.constant 0 : index
    %16 = vector.load %arg8[%c1, %c0_11, %c0_12] : memref<4x152x128xbf16, #tpu.memory_space<vmem>>, vector<1x128x128xbf16>
    %17 = vector.shape_cast %16 : vector<1x128x128xbf16> to vector<128x128xbf16>
    %18 = vector.shape_cast %15 : vector<128x128xbf16> to vector<1x128x128xbf16>
    tpu.vector_store %arg8[%c1, %c0_11, %c0_12], %18 {strides = array<i32>} : memref<4x152x128xbf16, #tpu.memory_space<vmem>>, vector<1x128x128xbf16>,
    %19 = vector.extract_strided_slice %10 {offsets = [256, 0], sizes = [128, 128], strides = [1, 1]} : vector<512x128xbf16> to vector<128x128xbf16>
    %c2 = arith.constant 2 : index
    %c0_13 = arith.constant 0 : index
    %c0_14 = arith.constant 0 : index
    %20 = vector.load %arg8[%c2, %c0_13, %c0_14] : memref<4x152x128xbf16, #tpu.memory_space<vmem>>, vector<1x128x128xbf16>
    %21 = vector.shape_cast %20 : vector<1x128x128xbf16> to vector<128x128xbf16>
    %22 = vector.shape_cast %19 : vector<128x128xbf16> to vector<1x128x128xbf16>
    tpu.vector_store %arg8[%c2, %c0_13, %c0_14], %22 {strides = array<i32>} : memref<4x152x128xbf16, #tpu.memory_space<vmem>>, vector<1x128x128xbf16>,
    %23 = vector.extract_strided_slice %10 {offsets = [384, 0], sizes = [128, 128], strides = [1, 1]} : vector<512x128xbf16> to vector<128x128xbf16>
    %c3 = arith.constant 3 : index
    %c0_15 = arith.constant 0 : index
    %c0_16 = arith.constant 0 : index
    %24 = vector.load %arg8[%c3, %c0_15, %c0_16] : memref<4x152x128xbf16, #tpu.memory_space<vmem>>, vector<1x128x128xbf16>
    %25 = vector.shape_cast %24 : vector<1x128x128xbf16> to vector<128x128xbf16>
    %26 = vector.shape_cast %23 : vector<128x128xbf16> to vector<1x128x128xbf16>
    tpu.vector_store %arg8[%c3, %c0_15, %c0_16], %26 {strides = array<i32>} : memref<4x152x128xbf16, #tpu.memory_space<vmem>>, vector<1x128x128xbf16>,
    %c0_17 = arith.constant 0 : index
    %c0_18 = arith.constant 0 : index
    %c0_19 = arith.constant 0 : index
    %c0_20 = arith.constant 0 : index
    %c0_21 = arith.constant 0 : index
    %27 = vector.load %arg3[%c0_17, %c0_18, %c0_19, %c0_20, %c0_21] : memref<1x4x1x16x128xbf16, #tpu.memory_space<vmem>>, vector<1x4x1x16x128xbf16>
    %28 = vector.shape_cast %27 : vector<1x4x1x16x128xbf16> to vector<4x1x16x128xbf16>
    %29 = vector.shape_cast %28 : vector<4x1x16x128xbf16> to vector<64x128xbf16>
    %cst_22 = arith.constant dense<0.000000e+00> : vector<64x128xf32>
    %30 = tpu.matmul %29, %0, %cst_22 {dimension_numbers = #tpu.dot_dimension_numbers<[1], [0], [0], [1], [0, 0, 1, 1], [], []>} : vector<64x128xbf16>, vector<128x128xbf16>, vector<64x128xf32> -> vector<64x128xf32>
    %cst_23 = arith.constant 0.000000e+00 : f32
    %31 = vector.broadcast %cst_23 : f32 to vector<64x128xf32>
    %32 = arith.cmpf oge, %30, %31 : vector<64x128xf32>
    %cst_24 = arith.constant 1.000000e-01 : f32
    %33 = vector.broadcast %cst_24 : f32 to vector<64x128xf32>
    %34 = arith.mulf %33, %30 : vector<64x128xf32>
    %35 = arith.select %32, %30, %34 : vector<64x128xi1>, vector<64x128xf32>
    %36 = arith.truncf %35 : vector<64x128xf32> to vector<64x128xbf16>
    %37 = vector.extract_strided_slice %36 {offsets = [0, 0], sizes = [16, 128], strides = [1, 1]} : vector<64x128xbf16> to vector<16x128xbf16>
    %c0_25 = arith.constant 0 : index
    %c128 = arith.constant 128 : index
    %c0_26 = arith.constant 0 : index
    %38 = vector.load %arg8[%c0_25, %c128, %c0_26] : memref<4x152x128xbf16, #tpu.memory_space<vmem>>, vector<1x16x128xbf16>
    %39 = vector.shape_cast %38 : vector<1x16x128xbf16> to vector<16x128xbf16>
    %40 = vector.shape_cast %37 : vector<16x128xbf16> to vector<1x16x128xbf16>
    tpu.vector_store %arg8[%c0_25, %c128, %c0_26], %40 {strides = array<i32>} : memref<4x152x128xbf16, #tpu.memory_space<vmem>>, vector<1x16x128xbf16>,
    %41 = vector.extract_strided_slice %36 {offsets = [16, 0], sizes = [16, 128], strides = [1, 1]} : vector<64x128xbf16> to vector<16x128xbf16>
    %c1_27 = arith.constant 1 : index
    %c128_28 = arith.constant 128 : index
    %c0_29 = arith.constant 0 : index
    %42 = vector.load %arg8[%c1_27, %c128_28, %c0_29] : memref<4x152x128xbf16, #tpu.memory_space<vmem>>, vector<1x16x128xbf16>
    %43 = vector.shape_cast %42 : vector<1x16x128xbf16> to vector<16x128xbf16>
    %44 = vector.shape_cast %41 : vector<16x128xbf16> to vector<1x16x128xbf16>
    tpu.vector_store %arg8[%c1_27, %c128_28, %c0_29], %44 {strides = array<i32>} : memref<4x152x128xbf16, #tpu.memory_space<vmem>>, vector<1x16x128xbf16>,
    %45 = vector.extract_strided_slice %36 {offsets = [32, 0], sizes = [16, 128], strides = [1, 1]} : vector<64x128xbf16> to vector<16x128xbf16>
    %c2_30 = arith.constant 2 : index
    %c128_31 = arith.constant 128 : index
    %c0_32 = arith.constant 0 : index
    %46 = vector.load %arg8[%c2_30, %c128_31, %c0_32] : memref<4x152x128xbf16, #tpu.memory_space<vmem>>, vector<1x16x128xbf16>
    %47 = vector.shape_cast %46 : vector<1x16x128xbf16> to vector<16x128xbf16>
    %48 = vector.shape_cast %45 : vector<16x128xbf16> to vector<1x16x128xbf16>
    tpu.vector_store %arg8[%c2_30, %c128_31, %c0_32], %48 {strides = array<i32>} : memref<4x152x128xbf16, #tpu.memory_space<vmem>>, vector<1x16x128xbf16>,
    %49 = vector.extract_strided_slice %36 {offsets = [48, 0], sizes = [16, 128], strides = [1, 1]} : vector<64x128xbf16> to vector<16x128xbf16>
    %c3_33 = arith.constant 3 : index
    %c128_34 = arith.constant 128 : index
    %c0_35 = arith.constant 0 : index
    %50 = vector.load %arg8[%c3_33, %c128_34, %c0_35] : memref<4x152x128xbf16, #tpu.memory_space<vmem>>, vector<1x16x128xbf16>
    %51 = vector.shape_cast %50 : vector<1x16x128xbf16> to vector<16x128xbf16>
    %52 = vector.shape_cast %49 : vector<16x128xbf16> to vector<1x16x128xbf16>
    tpu.vector_store %arg8[%c3_33, %c128_34, %c0_35], %52 {strides = array<i32>} : memref<4x152x128xbf16, #tpu.memory_space<vmem>>, vector<1x16x128xbf16>,
    %cst_36 = arith.constant 0.000000e+00 : bf16
    %53 = vector.broadcast %cst_36 : bf16 to vector<4x8x128xbf16>
    %c0_37 = arith.constant 0 : index
    %c144 = arith.constant 144 : index
    %c0_38 = arith.constant 0 : index
    %54 = vector.load %arg8[%c0_37, %c144, %c0_38] : memref<4x152x128xbf16, #tpu.memory_space<vmem>>, vector<4x8x128xbf16>
    tpu.vector_store %arg8[%c0_37, %c144, %c0_38], %53 {strides = array<i32>} : memref<4x152x128xbf16, #tpu.memory_space<vmem>>, vector<4x8x128xbf16>,
    %c0_39 = arith.constant 0 : index
    %c0_40 = arith.constant 0 : index
    %c0_41 = arith.constant 0 : index
    %55 = vector.load %arg8[%c0_39, %c0_40, %c0_41] : memref<4x152x128xbf16, #tpu.memory_space<vmem>>, vector<1x128x128xbf16>
    %56 = vector.shape_cast %55 : vector<1x128x128xbf16> to vector<128x128xbf16>
    %c1_42 = arith.constant 1 : index
    %c0_43 = arith.constant 0 : index
    %c0_44 = arith.constant 0 : index
    %57 = vector.load %arg8[%c1_42, %c0_43, %c0_44] : memref<4x152x128xbf16, #tpu.memory_space<vmem>>, vector<1x128x128xbf16>
    %58 = vector.shape_cast %57 : vector<1x128x128xbf16> to vector<128x128xbf16>
    %c0_45 = arith.constant 0 : index
    %c1_46 = arith.constant 1 : index
    %c0_47 = arith.constant 0 : index
    %59 = vector.load %arg8[%c0_45, %c1_46, %c0_47] : memref<4x152x128xbf16, #tpu.memory_space<vmem>>, vector<1x128x128xbf16>
    %60 = vector.shape_cast %59 : vector<1x128x128xbf16> to vector<128x128xbf16>
    %c2_48 = arith.constant 2 : index
    %c0_49 = arith.constant 0 : index
    %c0_50 = arith.constant 0 : index
    %61 = vector.load %arg8[%c2_48, %c0_49, %c0_50] : memref<4x152x128xbf16, #tpu.memory_space<vmem>>, vector<1x128x128xbf16>
    %62 = vector.shape_cast %61 : vector<1x128x128xbf16> to vector<128x128xbf16>
    %c3_51 = arith.constant 3 : index
    %c0_52 = arith.constant 0 : index
    %c0_53 = arith.constant 0 : index
    %63 = vector.load %arg8[%c3_51, %c0_52, %c0_53] : memref<4x152x128xbf16, #tpu.memory_space<vmem>>, vector<1x128x128xbf16>
    %64 = vector.shape_cast %63 : vector<1x128x128xbf16> to vector<128x128xbf16>
    %c2_54 = arith.constant 2 : index
    %c1_55 = arith.constant 1 : index
    %c0_56 = arith.constant 0 : index
    %65 = vector.load %arg8[%c2_54, %c1_55, %c0_56] : memref<4x152x128xbf16, #tpu.memory_space<vmem>>, vector<1x128x128xbf16>
    %66 = vector.shape_cast %65 : vector<1x128x128xbf16> to vector<128x128xbf16>
    %c0_57 = arith.constant 0 : index
    %c16 = arith.constant 16 : index
    %c0_58 = arith.constant 0 : index
    %67 = vector.load %arg8[%c0_57, %c16, %c0_58] : memref<4x152x128xbf16, #tpu.memory_space<vmem>>, vector<1x128x128xbf16>
    %68 = vector.shape_cast %67 : vector<1x128x128xbf16> to vector<128x128xbf16>
    %c1_59 = arith.constant 1 : index
    %c16_60 = arith.constant 16 : index
    %c0_61 = arith.constant 0 : index
    %69 = vector.load %arg8[%c1_59, %c16_60, %c0_61] : memref<4x152x128xbf16, #tpu.memory_space<vmem>>, vector<1x128x128xbf16>
    %70 = vector.shape_cast %69 : vector<1x128x128xbf16> to vector<128x128xbf16>
    %c0_62 = arith.constant 0 : index
    %c17 = arith.constant 17 : index
    %c0_63 = arith.constant 0 : index
    %71 = vector.load %arg8[%c0_62, %c17, %c0_63] : memref<4x152x128xbf16, #tpu.memory_space<vmem>>, vector<1x128x128xbf16>
    %72 = vector.shape_cast %71 : vector<1x128x128xbf16> to vector<128x128xbf16>
    %73 = tpu.concatenate %56, %58, %60, %62, %64, %66, %68, %70, %72 in 1 : vector<128x128xbf16>, vector<128x128xbf16>, vector<128x128xbf16>, vector<128x128xbf16>, vector<128x128xbf16>, vector<128x128xbf16>, vector<128x128xbf16>, vector<128x128xbf16>, vector<128x128xbf16> -> vector<128x1152xbf16>
    %c0_64 = arith.constant 0 : index
    %c0_65 = arith.constant 0 : index
    %74 = vector.load %arg5[%c0_64, %c0_65] : memref<1152x128xbf16, #tpu.memory_space<vmem>>, vector<1152x128xbf16>
    %cst_66 = arith.constant dense<0.000000e+00> : vector<128x128xf32>
    %75 = tpu.matmul %73, %74, %cst_66 {dimension_numbers = #tpu.dot_dimension_numbers<[1], [0], [0], [1], [0, 0, 1, 1], [], []>} : vector<128x1152xbf16>, vector<1152x128xbf16>, vector<128x128xf32> -> vector<128x128xf32>
    %cst_67 = arith.constant 0.000000e+00 : f32
    %76 = vector.broadcast %cst_67 : f32 to vector<128x128xf32>
    %77 = arith.cmpf oge, %75, %76 : vector<128x128xf32>
    %cst_68 = arith.constant 1.000000e-01 : f32
    %78 = vector.broadcast %cst_68 : f32 to vector<128x128xf32>
    %79 = arith.mulf %78, %75 : vector<128x128xf32>
    %80 = arith.select %77, %75, %79 : vector<128x128xi1>, vector<128x128xf32>
    %81 = arith.truncf %80 : vector<128x128xf32> to vector<128x128xbf16>
    %c0_69 = arith.constant 0 : index
    %c3_70 = arith.constant 3 : index
    %c0_71 = arith.constant 0 : index
    %c0_72 = arith.constant 0 : index
    %c0_73 = arith.constant 0 : index
    %82 = vector.load %arg2[%c0_69, %c3_70, %c0_71, %c0_72, %c0_73] : memref<1x4x8x16x128xbf16, #tpu.memory_space<vmem>>, vector<1x1x8x16x128xbf16>
    %83 = vector.shape_cast %82 : vector<1x1x8x16x128xbf16> to vector<8x16x128xbf16>
    %84 = vector.shape_cast %83 : vector<8x16x128xbf16> to vector<128x128xbf16>
    %85 = tpu.concatenate %81, %84 in 1 : vector<128x128xbf16>, vector<128x128xbf16> -> vector<128x256xbf16>
    %c0_74 = arith.constant 0 : index
    %c0_75 = arith.constant 0 : index
    %86 = vector.load %arg6[%c0_74, %c0_75] : memref<256x128xbf16, #tpu.memory_space<vmem>>, vector<256x128xbf16>
    %cst_76 = arith.constant dense<0.000000e+00> : vector<128x128xf32>
    %87 = tpu.matmul %85, %86, %cst_76 {dimension_numbers = #tpu.dot_dimension_numbers<[1], [0], [0], [1], [0, 0, 1, 1], [], []>} : vector<128x256xbf16>, vector<256x128xbf16>, vector<128x128xf32> -> vector<128x128xf32>
    %cst_77 = arith.constant 0.000000e+00 : f32
    %88 = vector.broadcast %cst_77 : f32 to vector<128x128xf32>
    %89 = arith.cmpf oge, %87, %88 : vector<128x128xf32>
    %cst_78 = arith.constant 1.000000e-01 : f32
    %90 = vector.broadcast %cst_78 : f32 to vector<128x128xf32>
    %91 = arith.mulf %90, %87 : vector<128x128xf32>
    %92 = arith.select %89, %87, %91 : vector<128x128xi1>, vector<128x128xf32>
    %93 = vector.shape_cast %92 : vector<128x128xf32> to vector<8x16x128xf32>
    %94 = vector.extract_strided_slice %93 {offsets = [0, 0, 0], sizes = [8, 8, 128], strides = [1, 1, 1]} : vector<8x16x128xf32> to vector<8x8x128xf32>
    %c0_79 = arith.constant 0 : index
    %c0_80 = arith.constant 0 : index
    %c0_81 = arith.constant 0 : index
    %c0_82 = arith.constant 0 : index
    %95 = vector.load %arg7[%c0_79, %c0_80, %c0_81, %c0_82] : memref<1x8x8x128xf32, #tpu.memory_space<vmem>>, vector<1x8x8x128xf32>
    %96 = vector.shape_cast %95 : vector<1x8x8x128xf32> to vector<8x8x128xf32>
    %97 = vector.shape_cast %94 : vector<8x8x128xf32> to vector<1x8x8x128xf32>
    tpu.vector_store %arg7[%c0_79, %c0_80, %c0_81, %c0_82], %97 {strides = array<i32>} : memref<1x8x8x128xf32, #tpu.memory_space<vmem>>, vector<1x8x8x128xf32>,
    return
  }
  func.func @transform_0(%arg0: i32, %arg1: i32) -> (i32, i32, i32, i32, i32) {
    %c0_i32 = arith.constant 0 : i32
    %c0_i32_0 = arith.constant 0 : i32
    %c0_i32_1 = arith.constant 0 : i32
    %c0_i32_2 = arith.constant 0 : i32
    return %arg0, %c0_i32, %arg1, %c0_i32_0, %c0_i32_1 : i32, i32, i32, i32, i32
  }
  func.func @transform_1(%arg0: i32, %arg1: i32) -> (i32, i32, i32, i32, i32) {
    %c1_i32 = arith.constant 1 : i32
    %0 = arith.addi %arg1, %c1_i32 : i32
    %c8_i32 = arith.constant 8 : i32
    %1 = arith.muli %0, %c8_i32 : i32
    %c0_i32 = arith.constant 0 : i32
    %c0_i32_0 = arith.constant 0 : i32
    %c0_i32_1 = arith.constant 0 : i32
    %c0_i32_2 = arith.constant 0 : i32
    return %arg0, %c0_i32, %1, %c0_i32_0, %c0_i32_1 : i32, i32, i32, i32, i32
  }
  func.func @transform_2(%arg0: i32, %arg1: i32) -> (i32, i32) {
    %c0_i32 = arith.constant 0 : i32
    %c0_i32_0 = arith.constant 0 : i32
    %c0_i32_1 = arith.constant 0 : i32
    return %c0_i32, %c0_i32_0 : i32, i32
  }
  func.func @transform_3(%arg0: i32, %arg1: i32) -> (i32, i32) {
    %c0_i32 = arith.constant 0 : i32
    %c0_i32_0 = arith.constant 0 : i32
    %c0_i32_1 = arith.constant 0 : i32
    return %c0_i32, %c0_i32_0 : i32, i32
  }
  func.func @transform_4(%arg0: i32, %arg1: i32) -> (i32, i32) {
    %c0_i32 = arith.constant 0 : i32
    %c0_i32_0 = arith.constant 0 : i32
    %c0_i32_1 = arith.constant 0 : i32
    return %c0_i32, %c0_i32_0 : i32, i32
  }
  func.func @transform_5(%arg0: i32, %arg1: i32) -> (i32, i32, i32, i32) {
    %c0_i32 = arith.constant 0 : i32
    %c0_i32_0 = arith.constant 0 : i32
    %c0_i32_1 = arith.constant 0 : i32
    return %arg0, %arg1, %c0_i32, %c0_i32_0 : i32, i32, i32, i32
  }
}

</mosaic_0001>

<bundles_post_ra>
// kernel: resnet_bottleneck_block.1
= control target key start
LH: loop header
LB: loop body
LE: loop exit
PB: predicated region body
PF: predicated region fallthrough
CT: control target
= control target key end

     0   :  { %s5561_s18 = smov 0   ;;  %s5563_s19 = smov 0   ;;  %s6430_s0 = inlined_call_operand.vmem [shape: bf16[2,4,9,16,128], index: 0, kind: input, shape index: {}, may-alias: {0,1}]   ;;  %s6431_s1 = inlined_call_operand.vmem [shape: bf16[2,4,9,16,128], index: 1, kind: input, shape index: {}, may-alias: {0,1}]   ;;  %s6432_s2 = inlined_call_operand.vmem [shape: bf16[128,128], index: 2, kind: input, shape index: {}]   ;;  %s6433_s3 = inlined_call_operand.vmem [shape: bf16[1152,128], index: 3, kind: input, shape index: {}]   ;;  %s6434_s4 = inlined_call_operand.vmem [shape: bf16[256,128], index: 4, kind: input, shape index: {}]   ;;  %s6435_s5 = inlined_call_operand.vmem [shape: f32[2,8,8,128], index: 5, kind: output, shape index: {}]  }
   0x1   :  { %s5565_s20 = smov 0   ;;  %s5567_s21 = smov 0  }
   0x2   :  { %s5569_s22 = smov 0  }
   0x3 LB: > { %s27_s23 = sadd.s32 1, %s5520_s21  ;;  %p43_p1 = scmp.ne.s32.totalorder %s5512_s19, %s5508_s18  ;;  %s5524_s22 = sphi %s5569_s22, %s15_s22   ;;  %s5520_s21 = sphi %s5567_s21, %s6440_s21   ;;  %s5516_s20 = sphi %s5565_s20, %s6439_s20   ;;  %s5512_s19 = sphi %s5563_s19, %s6438_s19   ;;  %s5508_s18 = sphi %s5561_s18, %s6437_s18  }
   0x4   : > { %p29_p0 = scmp.ge.s32.totalorder %s27_s23, 2  ;;  %p44_p2 = scmp.eq.s32.totalorder %s5524_s22, 0 }
   0x5   : > { %s36_s26 = sadd.s32 1, %s5512_s19  ;;  %p4123_p5 = scmp.ge.s32.totalorder %s5524_s22, 2 }
   0x6   : > { %s6442_s23 = smov (%p29_p0, %s27_s23), 0  ;;  %p5592_p3 = por %p44_p2, %p43_p1 }
   0x7   : > { %s31_s25 = ssub.s32 %s5520_s21, %s6442_s23  ;;  %201 = sbr.rel (%p4123_p5) target bundleno = 79 (0x4f), region = 28 }
   0x8   : > { %p34_p4 = scmp.eq.s32.totalorder %s31_s25, 0 }
   0xa   : > { %s5600_s27 = scalar_select %p34_p4, %s5512_s19, %s36_s26  }
   0xe   : > { %204 = sbr.rel (!%p5592_p3) target bundleno = 72 (0x48), region = 32  ;;  %s206_s28 = sand.u32 (%p5592_p3), 1, %s5512_s19  }
   0xf   : > { %s5219_s29 = smul.u32 (%p5592_p3), 288, %s5520_s21  ;;  %s4124_s30 = sshll.u32 (%p5592_p3), %s206_s28, 8 }
  0x10   : > { %s5612_s9 = scalar_lea.vmem (%p5592_p3), [#allocation3], %s4124_s30   ;;  %s5614_s10 = smov (%p5592_p3), 0  }
  0x11   : > { %s5610_s8 = scalar_lea.vmem (%p5592_p3), %s6430_s0, %s5219_s29  }
  0x15 LB: >> { %v240_v0 = vld [vmem:[%s5610_s8] sm:$0xf]  ;;  %v242_v1 = vld [vmem:[%s5610_s8 + $0x4] sm:$0xf]  ;;  %v244_v2 = vld [vmem:[%s5610_s8 + $0x8] sm:$0xf]  ;;  %s5528_s10 = sphi %s5614_s10, %s234_s10  }
  0x16   : >> { %241 = vst [vmem:[%s5612_s9] sm:$0xf] %v240_v0  ;;  %243 = vst [vmem:[%s5612_s9 + $0x4] sm:$0xf] %v242_v1  ;;  %v246_v3 = vld [vmem:[%s5610_s8 + $0xc] sm:$0xf]  ;;  %s234_s10 = sadd.s32 1, %s5528_s10  }
  0x17   : >> { %245 = vst [vmem:[%s5612_s9 + $0x8] sm:$0xf] %v244_v2  ;;  %v248_v4 = vld [vmem:[%s5610_s8 + $0x10] sm:$0xf]  ;;  %v250_v5 = vld [vmem:[%s5610_s8 + $0x14] sm:$0xf] }
  0x18   : >> { %247 = vst [vmem:[%s5612_s9 + $0xc] sm:$0xf] %v246_v3  ;;  %249 = vst [vmem:[%s5612_s9 + $0x10] sm:$0xf] %v248_v4  ;;  %v252_v6 = vld [vmem:[%s5610_s8 + $0x18] sm:$0xf] }
  0x19   : >> { %251 = vst [vmem:[%s5612_s9 + $0x14] sm:$0xf] %v250_v5  ;;  %v254_v7 = vld [vmem:[%s5610_s8 + $0x1c] sm:$0xf]  ;;  %v256_v8 = vld [vmem:[%s5610_s8 + $0x20] sm:$0xf] }
  0x1a   : >> { %253 = vst [vmem:[%s5612_s9 + $0x18] sm:$0xf] %v252_v6  ;;  %255 = vst [vmem:[%s5612_s9 + $0x1c] sm:$0xf] %v254_v7  ;;  %v258_v9 = vld [vmem:[%s5610_s8 + $0x24] sm:$0xf] }
  0x1b   : >> { %257 = vst [vmem:[%s5612_s9 + $0x20] sm:$0xf] %v256_v8  ;;  %v260_v10 = vld [vmem:[%s5610_s8 + $0x28] sm:$0xf]  ;;  %v262_v11 = vld [vmem:[%s5610_s8 + $0x2c] sm:$0xf] }
  0x1c   : >> { %259 = vst [vmem:[%s5612_s9 + $0x24] sm:$0xf] %v258_v9  ;;  %261 = vst [vmem:[%s5612_s9 + $0x28] sm:$0xf] %v260_v10  ;;  %v264_v12 = vld [vmem:[%s5610_s8 + $0x30] sm:$0xf] }
  0x1d   : >> { %263 = vst [vmem:[%s5612_s9 + $0x2c] sm:$0xf] %v262_v11  ;;  %v266_v13 = vld [vmem:[%s5610_s8 + $0x34] sm:$0xf]  ;;  %v268_v14 = vld [vmem:[%s5610_s8 + $0x38] sm:$0xf] }
  0x1e   : >> { %265 = vst [vmem:[%s5612_s9 + $0x30] sm:$0xf] %v264_v12  ;;  %267 = vst [vmem:[%s5612_s9 + $0x34] sm:$0xf] %v266_v13  ;;  %v270_v15 = vld [vmem:[%s5610_s8 + $0x3c] sm:$0xf] }
  0x1f   : >> { %269 = vst [vmem:[%s5612_s9 + $0x38] sm:$0xf] %v268_v14  ;;  %v272_v16 = vld [vmem:[%s5610_s8 + $0x48] sm:$0xf]  ;;  %v274_v17 = vld [vmem:[%s5610_s8 + $0x4c] sm:$0xf] }
  0x20   : >> { %271 = vst [vmem:[%s5612_s9 + $0x3c] sm:$0xf] %v270_v15  ;;  %273 = vst [vmem:[%s5612_s9 + $0x40] sm:$0xf] %v272_v16  ;;  %v276_v18 = vld [vmem:[%s5610_s8 + $0x50] sm:$0xf] }
  0x21   : >> { %275 = vst [vmem:[%s5612_s9 + $0x44] sm:$0xf] %v274_v17  ;;  %v278_v19 = vld [vmem:[%s5610_s8 + $0x54] sm:$0xf]  ;;  %v280_v20 = vld [vmem:[%s5610_s8 + $0x58] sm:$0xf] }
  0x22   : >> { %277 = vst [vmem:[%s5612_s9 + $0x48] sm:$0xf] %v276_v18  ;;  %279 = vst [vmem:[%s5612_s9 + $0x4c] sm:$0xf] %v278_v19  ;;  %v282_v21 = vld [vmem:[%s5610_s8 + $0x5c] sm:$0xf] }
  0x23   : >> { %281 = vst [vmem:[%s5612_s9 + $0x50] sm:$0xf] %v280_v20  ;;  %v284_v22 = vld [vmem:[%s5610_s8 + $0x60] sm:$0xf]  ;;  %v286_v23 = vld [vmem:[%s5610_s8 + $0x64] sm:$0xf] }
  0x24   : >> { %283 = vst [vmem:[%s5612_s9 + $0x54] sm:$0xf] %v282_v21  ;;  %285 = vst [vmem:[%s5612_s9 + $0x58] sm:$0xf] %v284_v22  ;;  %v288_v24 = vld [vmem:[%s5610_s8 + $0x68] sm:$0xf] }
  0x25   : >> { %287 = vst [vmem:[%s5612_s9 + $0x5c] sm:$0xf] %v286_v23  ;;  %v290_v25 = vld [vmem:[%s5610_s8 + $0x6c] sm:$0xf]  ;;  %v292_v26 = vld [vmem:[%s5610_s8 + $0x70] sm:$0xf] }
  0x26   : >> { %289 = vst [vmem:[%s5612_s9 + $0x60] sm:$0xf] %v288_v24  ;;  %291 = vst [vmem:[%s5612_s9 + $0x64] sm:$0xf] %v290_v25  ;;  %v294_v27 = vld [vmem:[%s5610_s8 + $0x74] sm:$0xf] }
  0x27   : >> { %293 = vst [vmem:[%s5612_s9 + $0x68] sm:$0xf] %v292_v26  ;;  %v296_v28 = vld [vmem:[%s5610_s8 + $0x78] sm:$0xf]  ;;  %v298_v29 = vld [vmem:[%s5610_s8 + $0x7c] sm:$0xf] }
  0x28   : >> { %295 = vst [vmem:[%s5612_s9 + $0x6c] sm:$0xf] %v294_v27  ;;  %297 = vst [vmem:[%s5612_s9 + $0x70] sm:$0xf] %v296_v28  ;;  %v300_v30 = vld [vmem:[%s5610_s8 + $0x80] sm:$0xf] }
  0x29   : >> { %299 = vst [vmem:[%s5612_s9 + $0x74] sm:$0xf] %v298_v29  ;;  %v302_v31 = vld [vmem:[%s5610_s8 + $0x84] sm:$0xf]  ;;  %v304_v32 = vld [vmem:[%s5610_s8 + $0x90] sm:$0xf] }
  0x2a   : >> { %301 = vst [vmem:[%s5612_s9 + $0x78] sm:$0xf] %v300_v30  ;;  %303 = vst [vmem:[%s5612_s9 + $0x7c] sm:$0xf] %v302_v31  ;;  %v306_v33 = vld [vmem:[%s5610_s8 + $0x94] sm:$0xf] }
  0x2b   : >> { %305 = vst [vmem:[%s5612_s9 + $0x80] sm:$0xf] %v304_v32  ;;  %v308_v34 = vld [vmem:[%s5610_s8 + $0x98] sm:$0xf]  ;;  %v310_v35 = vld [vmem:[%s5610_s8 + $0x9c] sm:$0xf] }
  0x2c   : >> { %307 = vst [vmem:[%s5612_s9 + $0x84] sm:$0xf] %v306_v33  ;;  %309 = vst [vmem:[%s5612_s9 + $0x88] sm:$0xf] %v308_v34  ;;  %v312_v36 = vld [vmem:[%s5610_s8 + $0xa0] sm:$0xf] }
  0x2d   : >> { %311 = vst [vmem:[%s5612_s9 + $0x8c] sm:$0xf] %v310_v35  ;;  %v314_v37 = vld [vmem:[%s5610_s8 + $0xa4] sm:$0xf]  ;;  %v316_v38 = vld [vmem:[%s5610_s8 + $0xa8] sm:$0xf] }
  0x2e   : >> { %313 = vst [vmem:[%s5612_s9 + $0x90] sm:$0xf] %v312_v36  ;;  %315 = vst [vmem:[%s5612_s9 + $0x94] sm:$0xf] %v314_v37  ;;  %v318_v39 = vld [vmem:[%s5610_s8 + $0xac] sm:$0xf] }
  0x2f   : >> { %317 = vst [vmem:[%s5612_s9 + $0x98] sm:$0xf] %v316_v38  ;;  %v320_v40 = vld [vmem:[%s5610_s8 + $0xb0] sm:$0xf]  ;;  %v322_v41 = vld [vmem:[%s5610_s8 + $0xb4] sm:$0xf] }
  0x30   : >> { %319 = vst [vmem:[%s5612_s9 + $0x9c] sm:$0xf] %v318_v39  ;;  %321 = vst [vmem:[%s5612_s9 + $0xa0] sm:$0xf] %v320_v40  ;;  %v324_v42 = vld [vmem:[%s5610_s8 + $0xb8] sm:$0xf] }
  0x31   : >> { %323 = vst [vmem:[%s5612_s9 + $0xa4] sm:$0xf] %v322_v41  ;;  %v326_v43 = vld [vmem:[%s5610_s8 + $0xbc] sm:$0xf]  ;;  %v328_v44 = vld [vmem:[%s5610_s8 + $0xc0] sm:$0xf] }
  0x32   : >> { %325 = vst [vmem:[%s5612_s9 + $0xa8] sm:$0xf] %v324_v42  ;;  %327 = vst [vmem:[%s5612_s9 + $0xac] sm:$0xf] %v326_v43  ;;  %v330_v45 = vld [vmem:[%s5610_s8 + $0xc4] sm:$0xf] }
  0x33   : >> { %329 = vst [vmem:[%s5612_s9 + $0xb0] sm:$0xf] %v328_v44  ;;  %v332_v46 = vld [vmem:[%s5610_s8 + $0xc8] sm:$0xf]  ;;  %v334_v47 = vld [vmem:[%s5610_s8 + $0xcc] sm:$0xf] }
  0x34   : >> { %331 = vst [vmem:[%s5612_s9 + $0xb4] sm:$0xf] %v330_v45  ;;  %333 = vst [vmem:[%s5612_s9 + $0xb8] sm:$0xf] %v332_v46  ;;  %v336_v48 = vld [vmem:[%s5610_s8 + $0xd8] sm:$0xf] }
  0x35   : >> { %335 = vst [vmem:[%s5612_s9 + $0xbc] sm:$0xf] %v334_v47  ;;  %v338_v49 = vld [vmem:[%s5610_s8 + $0xdc] sm:$0xf]  ;;  %v340_v50 = vld [vmem:[%s5610_s8 + $0xe0] sm:$0xf] }
  0x36   : >> { %337 = vst [vmem:[%s5612_s9 + $0xc0] sm:$0xf] %v336_v48  ;;  %339 = vst [vmem:[%s5612_s9 + $0xc4] sm:$0xf] %v338_v49  ;;  %v342_v51 = vld [vmem:[%s5610_s8 + $0xe4] sm:$0xf] }
  0x37   : >> { %341 = vst [vmem:[%s5612_s9 + $0xc8] sm:$0xf] %v340_v50  ;;  %v344_v52 = vld [vmem:[%s5610_s8 + $0xe8] sm:$0xf]  ;;  %v346_v53 = vld [vmem:[%s5610_s8 + $0xec] sm:$0xf] }
  0x38   : >> { %343 = vst [vmem:[%s5612_s9 + $0xcc] sm:$0xf] %v342_v51  ;;  %345 = vst [vmem:[%s5612_s9 + $0xd0] sm:$0xf] %v344_v52  ;;  %v348_v54 = vld [vmem:[%s5610_s8 + $0xf0] sm:$0xf] }
  0x39   : >> { %347 = vst [vmem:[%s5612_s9 + $0xd4] sm:$0xf] %v346_v53  ;;  %v350_v55 = vld [vmem:[%s5610_s8 + $0xf4] sm:$0xf]  ;;  %v352_v56 = vld [vmem:[%s5610_s8 + $0xf8] sm:$0xf] }
  0x3a   : >> { %349 = vst [vmem:[%s5612_s9 + $0xd8] sm:$0xf] %v348_v54  ;;  %351 = vst [vmem:[%s5612_s9 + $0xdc] sm:$0xf] %v350_v55  ;;  %v354_v57 = vld [vmem:[%s5610_s8 + $0xfc] sm:$0xf] }
  0x3b   : >> { %353 = vst [vmem:[%s5612_s9 + $0xe0] sm:$0xf] %v352_v56  ;;  %v356_v58 = vld [vmem:[%s5610_s8 + $0x100] sm:$0xf]  ;;  %v358_v59 = vld [vmem:[%s5610_s8 + $0x104] sm:$0xf] }
  0x3c   : >> { %355 = vst [vmem:[%s5612_s9 + $0xe4] sm:$0xf] %v354_v57  ;;  %357 = vst [vmem:[%s5612_s9 + $0xe8] sm:$0xf] %v356_v58  ;;  %v360_v60 = vld [vmem:[%s5610_s8 + $0x108] sm:$0xf] }
  0x3d   : >> { %359 = vst [vmem:[%s5612_s9 + $0xec] sm:$0xf] %v358_v59  ;;  %v362_v61 = vld [vmem:[%s5610_s8 + $0x10c] sm:$0xf]  ;;  %v364_v62 = vld [vmem:[%s5610_s8 + $0x110] sm:$0xf] }
  0x3e   : >> { %361 = vst [vmem:[%s5612_s9 + $0xf0] sm:$0xf] %v360_v60  ;;  %363 = vst [vmem:[%s5612_s9 + $0xf4] sm:$0xf] %v362_v61  ;;  %v366_v63 = vld [vmem:[%s5610_s8 + $0x114] sm:$0xf] }
  0x3f   : >> { %365 = vst [vmem:[%s5612_s9 + $0xf8] sm:$0xf] %v364_v62  ;;  %367 = vst [vmem:[%s5612_s9 + $0xfc] sm:$0xf] %v366_v63  ;;  %p233_p6 = scmp.ge.s32.totalorder %s234_s10, 1 }
  0x41   : > { %236 = sbr.rel (!%p233_p6) target bundleno = 21 (0x15), region = 204 }
  0x48 PF: > { %628 = sbr.rel (!%p5592_p3) target bundleno = 79 (0x4f), region = 94  ;;  %s630_s11 = sand.u32 (%p5592_p3), 1, %s5512_s19  }
  0x49   : > { %s4135_s12 = smul.u32 (%p5592_p3), 288, %s5520_s21  ;;  %s4134_s13 = sshll.u32 (%p5592_p3), %s630_s11, 5 }
  0x4a   : > { %s632_s17 = scalar_lea.vmem (%p5592_p3), [#allocation4], %s4134_s13 }
  0x4b   : > { %s4027_s16 = scalar_lea.vmem (%p5592_p3), %s6431_s1, %s4135_s12 }
  0x4c   : > { %v4136_v0 = vld [vmem:[%s4027_s16 + $0x40] sm:$0xff] (%p5592_p3)   ;;  %v4138_v1 = vld [vmem:[%s4027_s16 + $0x88] sm:$0xff] (%p5592_p3)   ;;  %v4140_v2 = vld [vmem:[%s4027_s16 + $0xd0] sm:$0xff] (%p5592_p3)  }
  0x4d   : > { %656 = vst [vmem:[%s632_s17] sm:$0xff] (%p5592_p3), %v4136_v0   ;;  %660 = vst [vmem:[%s632_s17 + $0x8] sm:$0xff] (%p5592_p3), %v4138_v1   ;;  %v4142_v3 = vld [vmem:[%s4027_s16 + $0x118] sm:$0xff] (%p5592_p3)  }
  0x4e   : > { %664 = vst [vmem:[%s632_s17 + $0x10] sm:$0xff] (%p5592_p3), %v4140_v2   ;;  %668 = vst [vmem:[%s632_s17 + $0x18] sm:$0xff] (%p5592_p3), %v4142_v3  }
  0x4f PF: > { %p4144_p7 = scmp.ge.s32.totalorder %s5524_s22, 1  ;;  %p708_p8 = scmp.lt.s32.totalorder %s5524_s22, 3 }
  0x51   : > { %p709_p9 = pnand %p4144_p7, %p708_p8 }
  0x52   : > { %v5293_v4 = vld [vmem:[%s6432_s2] sm:$0xff] (!%p709_p9)   ;;  %s715_s26 = sand.u32 (!%p709_p9), 1, %s5508_s18   ;;  %v5294_v5 = vld [vmem:[%s6432_s2 + $0x8] sm:$0xff] (!%p709_p9)   ;;  %v5295_v6 = vld [vmem:[%s6432_s2 + $0x10] sm:$0xff] (!%p709_p9)   ;;  %p766_p10 = scmp.lt.s32.totalorder (!%p709_p9), %s5516_s20, 1 }
  0x53   : > { %712 = sbr.rel (%p709_p9) target bundleno = 1007 (0x3ef), region = 135  ;;  %5067 = vmatprep.subr.bf16.mxu0 (!%p709_p9), %v5293_v4  ;;  %5203 = vmatprep.subr.bf16.mxu1 (!%p709_p9), %v5293_v4  ;;  %s4145_s30 = sshll.u32 (!%p709_p9), %s715_s26, 8  ;;  %v5296_v7 = vld [vmem:[%s6432_s2 + $0x18] sm:$0xff] (!%p709_p9)   ;;  %v5297_v10 = vld [vmem:[%s6432_s2 + $0x20] sm:$0xff] (!%p709_p9)   ;;  %v5298_v11 = vld [vmem:[%s6432_s2 + $0x28] sm:$0xff] (!%p709_p9)  }
  0x54   : > { %5068 = vmatpush3.bf16.msra.mxu0 (!%p709_p9), %v5293_v4  ;;  %5211 = vmatpush3.bf16.msra.mxu1 (!%p709_p9), %v5293_v4  ;;  %s5774_s10 = scalar_lea.vmem (!%p709_p9), [#allocation3], %s4145_s30  ;;  %v5299_v12 = vld [vmem:[%s6432_s2 + $0x30] sm:$0xff] (!%p709_p9)   ;;  %s4146_s17 = sshll.u32 (!%p709_p9), %s715_s26, 5  ;;  %v5300_v13 = vld [vmem:[%s6432_s2 + $0x38] sm:$0xff] (!%p709_p9)   ;;  %v5337_v48 = vld [vmem:[%s6433_s3 + $0x40] sm:$0xff] (!%p709_p9)  }
  0x55   : > { %5069 = vmatprep.subr.bf16.mxu0 (!%p709_p9), %v5294_v5  ;;  %5204 = vmatprep.subr.bf16.mxu1 (!%p709_p9), %v5294_v5  ;;  %v5301_v8 = vld [vmem:[%s5774_s10] sm:$0xff] (!%p709_p9)   ;;  %s5792_s28 = scalar_lea.vmem (!%p709_p9), [#allocation4], %s4146_s17  ;;  %v5303_v14 = vld [vmem:[%s5774_s10 + $0x8] sm:$0xff] (!%p709_p9)   ;;  %v5305_v16 = vld [vmem:[%s5774_s10 + $0x10] sm:$0xff] (!%p709_p9)  }
  0x56   : > { %v5302_v9 = vld [vmem:[%s5774_s10 + $0xc0] sm:$0xff] (!%p709_p9)   ;;  %5083 = vmatprep.mubr.bf16.mxu0 (!%p709_p9), %v5301_v8  ;;  %v5304_v15 = vld [vmem:[%s5774_s10 + $0xc8] sm:$0xff] (!%p709_p9)   ;;  %v5306_v17 = vld [vmem:[%s5774_s10 + $0xd0] sm:$0xff] (!%p709_p9)  }
  0x57   : > { %5131 = vmatprep.mubr.bf16.mxu1 (!%p709_p9), %v5302_v9  ;;  %v5307_v18 = vld [vmem:[%s5774_s10 + $0x18] sm:$0xff] (!%p709_p9)   ;;  %v5309_v20 = vld [vmem:[%s5774_s10 + $0x20] sm:$0xff] (!%p709_p9)   ;;  %v5311_v22 = vld [vmem:[%s5774_s10 + $0x28] sm:$0xff] (!%p709_p9)  }
  0x58   : > { %5070 = vmatpush3.bf16.msra.mxu0 (!%p709_p9), %v5294_v5  ;;  %5212 = vmatpush3.bf16.msra.mxu1 (!%p709_p9), %v5294_v5  ;;  %v5308_v19 = vld [vmem:[%s5774_s10 + $0xd8] sm:$0xff] (!%p709_p9)   ;;  %v5310_v21 = vld [vmem:[%s5774_s10 + $0xe0] sm:$0xff] (!%p709_p9)   ;;  %v5312_v23 = vld [vmem:[%s5774_s10 + $0xe8] sm:$0xff] (!%p709_p9)  }
  0x59   : > { %5071 = vmatprep.subr.bf16.mxu0 (!%p709_p9), %v5295_v6  ;;  %5205 = vmatprep.subr.bf16.mxu1 (!%p709_p9), %v5295_v6  ;;  %v5313_v24 = vld [vmem:[%s5774_s10 + $0x30] sm:$0xff] (!%p709_p9)   ;;  %v5315_v26 = vld [vmem:[%s5774_s10 + $0x38] sm:$0xff] (!%p709_p9)   ;;  %v5317_v28 = vld [vmem:[%s5774_s10 + $0x40] sm:$0xff] (!%p709_p9)  }
  0x5a   : > { %v5314_v25 = vld [vmem:[%s5774_s10 + $0xf0] sm:$0xff]   ;;  %v5316_v27 = vld [vmem:[%s5774_s10 + $0xf8] sm:$0xff]   ;;  %v5318_v29 = vld [vmem:[%s5792_s28] sm:$0xff]   ;;  %s6444_s20 = smov (!%p766_p10, %s5516_s20), 1 }
  0x5b   : > { %v5319_v30 = vld [vmem:[%s5774_s10 + $0x48] sm:$0xff]   ;;  %v5321_v32 = vld [vmem:[%s5774_s10 + $0x50] sm:$0xff]   ;;  %v5322_v34 = vld [vmem:[%s5774_s10 + $0x58] sm:$0xff]  }
  0x5c   : > { %5072 = vmatpush3.bf16.msra.mxu0 %v5295_v6  ;;  %5213 = vmatpush3.bf16.msra.mxu1 %v5295_v6  ;;  %v5320_v31 = vld [vmem:[%s5792_s28 + $0x8] sm:$0xff]   ;;  %v5335_v33 = vld [vmem:[%s5792_s28 + $0x10] sm:$0xff]   ;;  %v5336_v35 = vld [vmem:[%s5792_s28 + $0x18] sm:$0xff]  }
  0x5d   : > { %5073 = vmatprep.subr.bf16.mxu0 %v5296_v7  ;;  %5206 = vmatprep.subr.bf16.mxu1 %v5296_v7  ;;  %v5323_v36 = vld [vmem:[%s5774_s10 + $0x60] sm:$0xff]   ;;  %v5324_v37 = vld [vmem:[%s5774_s10 + $0x68] sm:$0xff]   ;;  %v5325_v38 = vld [vmem:[%s5774_s10 + $0x70] sm:$0xff]  }
  0x5e   : > { %v5326_v39 = vld [vmem:[%s5774_s10 + $0x78] sm:$0xff]   ;;  %v5327_v40 = vld [vmem:[%s5774_s10 + $0x80] sm:$0xff]   ;;  %v5328_v41 = vld [vmem:[%s5774_s10 + $0x88] sm:$0xff]  }
  0x5f   : > { %v5329_v42 = vld [vmem:[%s5774_s10 + $0x90] sm:$0xff]   ;;  %v5330_v43 = vld [vmem:[%s5774_s10 + $0x98] sm:$0xff]   ;;  %v5331_v44 = vld [vmem:[%s5774_s10 + $0xa0] sm:$0xff]  }
  0x60   : > { %5074 = vmatpush3.bf16.msra.mxu0 %v5296_v7  ;;  %5214 = vmatpush3.bf16.msra.mxu1 %v5296_v7  ;;  %v5332_v45 = vld [vmem:[%s5774_s10 + $0xa8] sm:$0xff]   ;;  %v5333_v46 = vld [vmem:[%s5774_s10 + $0xb0] sm:$0xff]   ;;  %v5334_v47 = vld [vmem:[%s5774_s10 + $0xb8] sm:$0xff]  }
  0x61   : > { %5075 = vmatprep.subr.bf16.mxu0 %v5297_v10  ;;  %5207 = vmatprep.subr.bf16.mxu1 %v5297_v10  ;;  %v5338_v49 = vld [vmem:[%s6433_s3] sm:$0xff]   ;;  %v5339_v50 = vld [vmem:[%s6433_s3 + $0x48] sm:$0xff]   ;;  %v5343_v53 = vld [vmem:[%s6433_s3 + $0x50] sm:$0xff]  }
  0x62   : > { %v5341_v51 = vld [vmem:[%s6433_s3 + $0x8] sm:$0xff]   ;;  %v5340_v52 = vld [vmem:[%s6433_s3 + $0x140] sm:$0xff]   ;;  %v5344_v54 = vld [vmem:[%s6433_s3 + $0x10] sm:$0xff]  }
  0x63   : > { %v5342_v55 = vld [vmem:[%s6433_s3 + $0x100] sm:$0xff]   ;;  %v5345_v56 = vld [vmem:[%s6433_s3 + $0x58] sm:$0xff]   ;;  %v5351_v60 = vld [vmem:[%s6433_s3 + $0x68] sm:$0xff]  }
  0x64   : > { %5076 = vmatpush3.bf16.msra.mxu0 %v5297_v10  ;;  %5215 = vmatpush3.bf16.msra.mxu1 %v5297_v10  ;;  %v5346_v57 = vld [vmem:[%s6433_s3 + $0x18] sm:$0xff]   ;;  %v5347_v58 = vld [vmem:[%s6433_s3 + $0x60] sm:$0xff]   ;;  %v5352_v61 = vld [vmem:[%s6433_s3 + $0x28] sm:$0xff]  }
  0x65   : > { %5077 = vmatprep.subr.bf16.mxu0 %v5298_v11  ;;  %5208 = vmatprep.subr.bf16.mxu1 %v5298_v11  ;;  %v5349_v59 = vld [vmem:[%s6433_s3 + $0x20] sm:$0xff]   ;;  %v5348_v62 = vld [vmem:[%s6433_s3 + $0x148] sm:$0xff]   ;;  %v5353_v0 = vld [vmem:[%s6433_s3 + $0x70] sm:$0xff]  }
  0x66   : > { %v5350_v63 = vld [vmem:[%s6433_s3 + $0x108] sm:$0xff]   ;;  %v5354_v1 = vld [vmem:[%s6433_s3 + $0x30] sm:$0xff]   ;;  %v5355_v2 = vld [vmem:[%s6433_s3 + $0x78] sm:$0xff]  }
  0x67   : > { %v5356_v3 = vld [vmem:[%s6433_s3 + $0x150] sm:$0xff]   ;;  %v5368_v8 = vld [vmem:[%s6433_s3 + $0x118] sm:$0xff]   ;;  %v5374_v9 = vld [vmem:[%s6433_s3 + $0x160] sm:$0xff]  }
  0x68   : > { %5078 = vmatpush3.bf16.msra.mxu0 %v5298_v11  ;;  %5216 = vmatpush3.bf16.msra.mxu1 %v5298_v11 }
  0x69   : > { %5079 = vmatprep.subr.bf16.mxu0 %v5299_v12  ;;  %5209 = vmatprep.subr.bf16.mxu1 %v5299_v12 }
  0x6c   : > { %5080 = vmatpush3.bf16.msra.mxu0 %v5299_v12  ;;  %5217 = vmatpush3.bf16.msra.mxu1 %v5299_v12 }
  0x6d   : > { %5081 = vmatprep.subr.bf16.mxu0 %v5300_v13  ;;  %5210 = vmatprep.subr.bf16.mxu1 %v5300_v13 }
  0x70   : > { %5082 = vmatpush3.bf16.msra.mxu0 %v5300_v13  ;;  %5218 = vmatpush3.bf16.msra.mxu1 %v5300_v13 }
  0x71   : > { %5147 = vmatprep.subr.bf16.mxu1 %v5293_v4  ;;  %4859 = vmatprep.subr.bf16.mxu0 %v5340_v52 }
  0x73   : > { %5084 = vmatmul.mubr.bf16.vlgmr.msra.gmra.mrb[0].mxu0 %v5303_v14  ;;  %5132 = vmatmul.mubr.bf16.vlgmr.msra.gmra.mrb[0].mxu1 %v5304_v15  ;;  %v5386_v14 = vld [vmem:[%s6433_s3 + $0x130] sm:$0xff]   ;;  %v5388_v15 = vld [vmem:[%s6433_s3 + $0x178] sm:$0xff]  }
  0x74   : > { %5148 = vmatpush3.bf16.msra.mxu1 %v5293_v4  ;;  %5087 = vmatprep.mubr.bf16.mxu0 %v5305_v16  ;;  %v5357_v4 = vld [vmem:[%s6433_s3 + $0x38] sm:$0xff]  }
  0x75   : > { %5149 = vmatprep.subr.bf16.mxu1 %v5294_v5  ;;  %5135 = vmatprep.mubr.bf16.mxu1 %v5306_v17  ;;  %v5389_v16 = vld [vmem:[%s6433_s3 + $0x138] sm:$0xff]   ;;  %v5930_v17 = vld [vmem:[%s6433_s3 + $0x200] sm:$0xff]  }
  0x76   : > { %4860 = vmatpush3.bf16.msra.mxu0 %v5342_v55 }
  0x77   : > { %4861 = vmatprep.subr.bf16.mxu0 %v5348_v62 }
  0x78   : > { %5150 = vmatpush3.bf16.msra.mxu1 %v5294_v5  ;;  %v5358_v5 = vld [vmem:[%s6433_s3 + $0x110] sm:$0xff]  }
  0x79   : > { %5151 = vmatprep.subr.bf16.mxu1 %v5295_v6 }
  0x7a   : > { %4862 = vmatpush3.bf16.msra.mxu0 %v5350_v63 }
  0x7b   : > { %5088 = vmatmul.mubr.bf16.gmra.mrb[4].mxu0 %v5307_v18  ;;  %5136 = vmatmul.mubr.bf16.gmra.mrb[4].mxu1 %v5308_v19 }
  0x7c   : > { %5152 = vmatpush3.bf16.msra.mxu1 %v5295_v6  ;;  %5091 = vmatprep.mubr.bf16.mxu0 %v5309_v20  ;;  %v5360_v6 = vld [vmem:[%s6433_s3 + $0xc0] sm:$0xff]  }
  0x7d   : > { %5153 = vmatprep.subr.bf16.mxu1 %v5296_v7  ;;  %5139 = vmatprep.mubr.bf16.mxu1 %v5310_v21 }
  0x7e   : > { %4863 = vmatprep.subr.bf16.mxu0 %v5356_v3 }
  0x7f   : > { %4864 = vmatpush3.bf16.msra.mxu0 %v5358_v5 }
  0x80   : > { %5154 = vmatpush3.bf16.msra.mxu1 %v5296_v7  ;;  %v5365_v7 = vld [vmem:[%s6433_s3 + $0x158] sm:$0xff]  }
  0x81   : > { %5155 = vmatprep.subr.bf16.mxu1 %v5297_v10  ;;  %4865 = vmatprep.subr.bf16.mxu0 %v5365_v7 }
  0x83   : > { %5092 = vmatmul.mubr.bf16.gmra.mrb[8].mxu0 %v5311_v22  ;;  %5140 = vmatmul.mubr.bf16.gmra.mrb[8].mxu1 %v5312_v23 }
  0x84   : > { %5156 = vmatpush3.bf16.msra.mxu1 %v5297_v10  ;;  %5095 = vmatprep.mubr.bf16.mxu0 %v5313_v24  ;;  %v5375_v10 = vld [vmem:[%s6433_s3 + $0x120] sm:$0xff]  }
  0x85   : > { %5157 = vmatprep.subr.bf16.mxu1 %v5298_v11  ;;  %5143 = vmatprep.mubr.bf16.mxu1 %v5314_v25 }
  0x86   : > { %4866 = vmatpush3.bf16.msra.mxu0 %v5368_v8 }
  0x87   : > { %4867 = vmatprep.subr.bf16.mxu0 %v5374_v9 }
  0x88   : > { %5158 = vmatpush3.bf16.msra.mxu1 %v5298_v11  ;;  %v5380_v11 = vld [vmem:[%s6433_s3 + $0x168] sm:$0xff]  }
  0x89   : > { %5159 = vmatprep.subr.bf16.mxu1 %v5299_v12 }
  0x8a   : > { %4868 = vmatpush3.bf16.msra.mxu0 %v5375_v10 }
  0x8b   : > { %5096 = vmatmul.mubr.bf16.gmra.mrb[12].mxu0 %v5315_v26  ;;  %5144 = vmatmul.mubr.bf16.gmra.mrb[12].mxu1 %v5316_v27 }
  0x8c   : > { %5160 = vmatpush3.bf16.msra.mxu1 %v5299_v12  ;;  %5099 = vmatprep.mubr.bf16.mxu0 %v5317_v28  ;;  %v5381_v12 = vld [vmem:[%s6433_s3 + $0x128] sm:$0xff]  }
  0x8d   : > { %5161 = vmatprep.subr.bf16.mxu1 %v5300_v13  ;;  %5163 = vmatprep.mubr.bf16.mxu1 %v5318_v29 }
  0x8e   : > { %4869 = vmatprep.subr.bf16.mxu0 %v5380_v11 }
  0x8f   : > { %4870 = vmatpush3.bf16.msra.mxu0 %v5381_v12 }
  0x90   : > { %5162 = vmatpush3.bf16.msra.mxu1 %v5300_v13  ;;  %v5383_v13 = vld [vmem:[%s6433_s3 + $0x170] sm:$0xff]  }
  0x91   : > { %4731 = vmatprep.subr.bf16.mxu1 %v5337_v48  ;;  %4871 = vmatprep.subr.bf16.mxu0 %v5383_v13 }
  0x93   : > { %5100 = vmatmul.mubr.bf16.gmra.mrb[16].mxu0 %v5319_v30  ;;  %5164 = vmatmul.mubr.bf16.vlgmr.msra.gmra.mrb[16].mxu1 %v5320_v31 }
  0x94   : > { %5103 = vmatprep.mubr.bf16.mxu0 %v5321_v32  ;;  %5167 = vmatprep.mubr.bf16.mxu1 %v5335_v33 }
  0x95   : > { %4732 = vmatpush3.bf16.msra.mxu1 %v5338_v49  ;;  %4872 = vmatpush3.bf16.msra.mxu0 %v5386_v14 }
  0x96   : > { %4733 = vmatprep.subr.bf16.mxu1 %v5339_v50  ;;  %4873 = vmatprep.subr.bf16.mxu0 %v5388_v15 }
  0x99   : > { %4734 = vmatpush3.bf16.msra.mxu1 %v5341_v51  ;;  %4874 = vmatpush3.bf16.msra.mxu0 %v5389_v16 }
  0x9a   : > { %4735 = vmatprep.subr.bf16.mxu1 %v5343_v53  ;;  %5171 = vmatprep.subr.bf16.mxu0 %v5930_v17 }
  0x9b   : > { %5104 = vmatmul.mubr.bf16.gmra.mrb[20].mxu0 %v5322_v34  ;;  %5168 = vmatmul.mubr.bf16.gmra.mrb[20].mxu1 %v5336_v35 }
  0x9c   : > { %5107 = vmatprep.mubr.bf16.mxu0 %v5323_v36 }
  0x9d   : > { %4736 = vmatpush3.bf16.msra.mxu1 %v5344_v54 }
  0x9e   : > { %4737 = vmatprep.subr.bf16.mxu1 %v5345_v56 }
  0xa1   : > { %4738 = vmatpush3.bf16.msra.mxu1 %v5346_v57 }
  0xa2   : > { %4739 = vmatprep.subr.bf16.mxu1 %v5347_v58 }
  0xa3   : > { %5108 = vmatmul.mubr.bf16.gmra.mrb[24].mxu0 %v5324_v37 }
  0xa4   : > { %5111 = vmatprep.mubr.bf16.mxu0 %v5325_v38 }
  0xa5   : > { %4740 = vmatpush3.bf16.msra.mxu1 %v5349_v59 }
  0xa6   : > { %4741 = vmatprep.subr.bf16.mxu1 %v5351_v60 }
  0xa9   : > { %4742 = vmatpush3.bf16.msra.mxu1 %v5352_v61 }
  0xaa   : > { %4743 = vmatprep.subr.bf16.mxu1 %v5353_v0 }
  0xab   : > { %5112 = vmatmul.mubr.bf16.gmra.mrb[28].mxu0 %v5326_v39 }
  0xac   : > { %5115 = vmatprep.mubr.bf16.mxu0 %v5327_v40 }
  0xad   : > { %4744 = vmatpush3.bf16.msra.mxu1 %v5354_v1 }
  0xae   : > { %4745 = vmatprep.subr.bf16.mxu1 %v5355_v2 }
  0xb1   : > { %4746 = vmatpush3.bf16.msra.mxu1 %v5357_v4 }
  0xb2   : > { %4795 = vmatprep.subr.bf16.mxu1 %v5360_v6 }
  0xb3   : > { %5116 = vmatmul.mubr.bf16.gmra.mrb[32].mxu0 %v5328_v41 }
  0xb4   : > { %5119 = vmatprep.mubr.bf16.mxu0 %v5329_v42 }
  0xbb   : > { %5120 = vmatmul.mubr.bf16.gmra.mrb[36].mxu0 %v5330_v43 }
  0xbc   : > { %5123 = vmatprep.mubr.bf16.mxu0 %v5331_v44 }
  0xc3   : > { %5124 = vmatmul.mubr.bf16.gmra.mrb[40].mxu0 %v5332_v45 }
  0xc4   : > { %5127 = vmatprep.mubr.bf16.mxu0 %v5333_v46 }
  0xcb   : > { %5128 = vmatmul.mubr.bf16.gmra.mrb[44].mxu0 %v5334_v47 }
 0x146   : > { %v5085_v18 = vpop.f32.mrb[0].mxu0  ;;  %v5133_v19 = vpop.f32.mrb[0].mxu1 }
 0x147   : > { %vm1387_vm0 = vcmp.ge.f32.partialorder %v5085_v18, 0.0  ;;  %v1451_v20 = vmul.f32 0.1, %v5085_v18  ;;  %v1130_v21 = vpop.f32.mrb[1].mxu0  ;;  %vm1435_vm1 = vcmp.ge.f32.partialorder %v5133_v19, 0.0  ;;  %v1322_v22 = vpop.f32.mrb[1].mxu1 }
 0x148   : > { %vm1385_vm2 = vcmp.ge.f32.partialorder %v1130_v21, 0.0  ;;  %v1449_v23 = vmul.f32 0.1, %v1130_v21  ;;  %v5086_v24 = vpop.f32.mrb[2].mxu0  ;;  %v1499_v25 = vmul.f32 0.1, %v5133_v19 }
 0x149   : > { %vm1388_vm3 = vcmp.ge.f32.partialorder %v5086_v24, 0.0  ;;  %v1452_v26 = vmul.f32 0.1, %v5086_v24  ;;  %v1133_v27 = vpop.f32.mrb[3].mxu0  ;;  %v5134_v28 = vpop.f32.mrb[2].mxu1  ;;  %v1515_v29 = vsel %vm1387_vm0, %v5085_v18, %v1451_v20  ;;  %vm1433_vm5 = vcmp.ge.f32.partialorder %v1322_v22, 0.0 }
 0x14a   : > { %vm1386_vm4 = vcmp.ge.f32.partialorder %v1133_v27, 0.0  ;;  %v1450_v30 = vmul.f32 0.1, %v1133_v27  ;;  %v1325_v31 = vpop.f32.mrb[3].mxu1  ;;  %v1513_v32 = vsel %vm1385_vm2, %v1130_v21, %v1449_v23  ;;  %v1563_v34 = vsel %vm1435_vm1, %v5133_v19, %v1499_v25 }
 0x14b   : > { %v1516_v33 = vsel %vm1388_vm3, %v5086_v24, %v1452_v26  ;;  %v1497_v35 = vmul.f32 0.1, %v1322_v22  ;;  %vm1434_vm6 = vcmp.ge.f32.partialorder %v1325_v31, 0.0  ;;  %v1498_v38 = vmul.f32 0.1, %v1325_v31 }
 0x14c   : > { %v4497_v36 = vpack.c.bf16 %v1516_v33, %v1515_v29  ;;  %v1514_v37 = vsel %vm1386_vm4, %v1133_v27, %v1450_v30  ;;  %v1500_v41 = vmul.f32 0.1, %v5134_v28  ;;  %vm1436_vm7 = vcmp.ge.f32.partialorder %v5134_v28, 0.0 }
 0x14d   : > { %v4492_v39 = vpack.c.bf16 %v1514_v37, %v1513_v32  ;;  %v1561_v40 = vsel %vm1433_vm5, %v1322_v22, %v1497_v35  ;;  %v1562_v44 = vsel %vm1434_vm6, %v1325_v31, %v1498_v38 }
 0x14e   : > { %4649 = vst [vmem:[#allocation2 + $0x8] sm:$0xff] %v4497_v36   ;;  %v5089_v42 = vpop.f32.mrb[4].mxu0  ;;  %v4465_v43 = vpack.c.bf16 %v1561_v40, %v1561_v40  ;;  %v5137_v45 = vpop.f32.mrb[4].mxu1  ;;  %v4607_v48 = vpack.c.bf16 %v1563_v34, %v1562_v44  ;;  %v1564_v56 = vsel %vm1436_vm7, %v5134_v28, %v1500_v41 }
 0x14f   : > { %4493 = vst [vmem:[#allocation2] sm:$0xff] %v4492_v39   ;;  %vm1391_vm8 = vcmp.ge.f32.partialorder %v5089_v42, 0.0  ;;  %v1455_v46 = vmul.f32 0.1, %v5089_v42  ;;  %v1146_v47 = vpop.f32.mrb[5].mxu0  ;;  %vm1439_vm9 = vcmp.ge.f32.partialorder %v5137_v45, 0.0 }
 0x150   : > { %v1338_v49 = vpop.f32.mrb[5].mxu1  ;;  %vm1389_vm10 = vcmp.ge.f32.partialorder %v1146_v47, 0.0  ;;  %v1453_v50 = vmul.f32 0.1, %v1146_v47  ;;  %v5090_v51 = vpop.f32.mrb[6].mxu0  ;;  %4670 = vst [vmem:[#allocation2 + $0xe8] sm:$0xff] %v4607_v48  }
 0x151   : > { %1884 = vst [vmem:[#allocation2 + $0xe4] sm:$0xf] %v4465_v43  ;;  %v1503_v52 = vmul.f32 0.1, %v5137_v45  ;;  %v1519_v53 = vsel %vm1391_vm8, %v5089_v42, %v1455_v46  ;;  %vm1392_vm11 = vcmp.ge.f32.partialorder %v5090_v51, 0.0  ;;  %v1149_v55 = vpop.f32.mrb[7].mxu0 }
 0x152   : > { %v1456_v54 = vmul.f32 0.1, %v5090_v51  ;;  %v5138_v57 = vpop.f32.mrb[6].mxu1  ;;  %v1517_v58 = vsel %vm1389_vm10, %v1146_v47, %v1453_v50  ;;  %vm1390_vm12 = vcmp.ge.f32.partialorder %v1149_v55, 0.0  ;;  %v1454_v59 = vmul.f32 0.1, %v1149_v55 }
 0x153   : > { %vm1437_vm13 = vcmp.ge.f32.partialorder %v1338_v49, 0.0  ;;  %v1341_v60 = vpop.f32.mrb[7].mxu1  ;;  %v1567_v62 = vsel %vm1439_vm9, %v5137_v45, %v1503_v52  ;;  %v1501_v63 = vmul.f32 0.1, %v1338_v49  ;;  %vm1440_vm14 = vcmp.ge.f32.partialorder %v5138_v57, 0.0 }
 0x154   : > { %v1520_v61 = vsel %vm1392_vm11, %v5090_v51, %v1456_v54  ;;  %v1518_v1 = vsel %vm1390_vm12, %v1149_v55, %v1454_v59  ;;  %vm1438_vm15 = vcmp.ge.f32.partialorder %v1341_v60, 0.0  ;;  %v1502_v2 = vmul.f32 0.1, %v1341_v60 }
 0x155   : > { %v4507_v0 = vpack.c.bf16 %v1520_v61, %v1519_v53  ;;  %v4502_v3 = vpack.c.bf16 %v1518_v1, %v1517_v58  ;;  %v1565_v4 = vsel %vm1437_vm13, %v1338_v49, %v1501_v63  ;;  %v1504_v5 = vmul.f32 0.1, %v5138_v57 }
 0x156   : > { %v5093_v6 = vpop.f32.mrb[8].mxu0  ;;  %v4612_v7 = vpack.c.bf16 %v1565_v4, %v1564_v56  ;;  %v1566_v8 = vsel %vm1438_vm15, %v1341_v60, %v1502_v2  ;;  %v5141_v9 = vpop.f32.mrb[8].mxu1 }
 0x157   : > { %4651 = vst [vmem:[#allocation2 + $0x18] sm:$0xff] %v4507_v0   ;;  %4650 = vst [vmem:[#allocation2 + $0x10] sm:$0xff] %v4502_v3   ;;  %vm1395_vm0 = vcmp.ge.f32.partialorder %v5093_v6, 0.0  ;;  %v1459_v10 = vmul.f32 0.1, %v5093_v6  ;;  %v1162_v11 = vpop.f32.mrb[9].mxu0  ;;  %v4617_v12 = vpack.c.bf16 %v1567_v62, %v1566_v8  ;;  %v1568_v21 = vsel %vm1440_vm14, %v5138_v57, %v1504_v5 }
 0x158   : > { %vm1443_vm1 = vcmp.ge.f32.partialorder %v5141_v9, 0.0  ;;  %v1354_v13 = vpop.f32.mrb[9].mxu1  ;;  %vm1393_vm2 = vcmp.ge.f32.partialorder %v1162_v11, 0.0  ;;  %v1457_v14 = vmul.f32 0.1, %v1162_v11  ;;  %v5094_v15 = vpop.f32.mrb[10].mxu0 }
 0x159   : > { %4671 = vst [vmem:[#allocation2 + $0xf0] sm:$0xff] %v4612_v7   ;;  %v1507_v16 = vmul.f32 0.1, %v5141_v9  ;;  %v1523_v18 = vsel %vm1395_vm0, %v5093_v6, %v1459_v10  ;;  %vm1396_vm3 = vcmp.ge.f32.partialorder %v5094_v15, 0.0  ;;  %v1460_v19 = vmul.f32 0.1, %v5094_v15 }
 0x15a   : > { %v1165_v20 = vpop.f32.mrb[11].mxu0  ;;  %4672 = vst [vmem:[#allocation2 + $0xf8] sm:$0xff] %v4617_v12   ;;  %v5142_v22 = vpop.f32.mrb[10].mxu1  ;;  %v1521_v23 = vsel %vm1393_vm2, %v1162_v11, %v1457_v14  ;;  %vm1441_vm5 = vcmp.ge.f32.partialorder %v1354_v13, 0.0  ;;  %v1505_v28 = vmul.f32 0.1, %v1354_v13 }
 0x15b   : > { %vm1394_vm4 = vcmp.ge.f32.partialorder %v1165_v20, 0.0  ;;  %v1458_v24 = vmul.f32 0.1, %v1165_v20  ;;  %v1357_v25 = vpop.f32.mrb[11].mxu1  ;;  %v1524_v26 = vsel %vm1396_vm3, %v5094_v15, %v1460_v19  ;;  %v1571_v27 = vsel %vm1443_vm1, %v5141_v9, %v1507_v16 }
 0x15c   : > { %v1508_v29 = vmul.f32 0.1, %v5142_v22  ;;  %v4517_v30 = vpack.c.bf16 %v1524_v26, %v1523_v18  ;;  %vm1442_vm6 = vcmp.ge.f32.partialorder %v1357_v25, 0.0  ;;  %v1506_v32 = vmul.f32 0.1, %v1357_v25 }
 0x15d   : > { %v1522_v31 = vsel %vm1394_vm4, %v1165_v20, %v1458_v24  ;;  %v1569_v34 = vsel %vm1441_vm5, %v1354_v13, %v1505_v28  ;;  %vm1444_vm7 = vcmp.ge.f32.partialorder %v5142_v22, 0.0 }
 0x15e   : > { %v4512_v33 = vpack.c.bf16 %v1522_v31, %v1521_v23  ;;  %4653 = vst [vmem:[#allocation2 + $0x28] sm:$0xff] %v4517_v30   ;;  %v5097_v35 = vpop.f32.mrb[12].mxu0  ;;  %v4622_v36 = vpack.c.bf16 %v1569_v34, %v1568_v21  ;;  %v1570_v37 = vsel %vm1442_vm6, %v1357_v25, %v1506_v32  ;;  %v5145_v38 = vpop.f32.mrb[12].mxu1  ;;  %v1572_v45 = vsel %vm1444_vm7, %v5142_v22, %v1508_v29 }
 0x15f   : > { %vm1399_vm8 = vcmp.ge.f32.partialorder %v5097_v35, 0.0  ;;  %v1463_v39 = vmul.f32 0.1, %v5097_v35  ;;  %v1178_v40 = vpop.f32.mrb[13].mxu0  ;;  %v4627_v41 = vpack.c.bf16 %v1571_v27, %v1570_v37  ;;  %vm1447_vm9 = vcmp.ge.f32.partialorder %v5145_v38, 0.0  ;;  %v1370_v42 = vpop.f32.mrb[13].mxu1 }
 0x160   : > { %4652 = vst [vmem:[#allocation2 + $0x20] sm:$0xff] %v4512_v33   ;;  %vm1397_vm10 = vcmp.ge.f32.partialorder %v1178_v40, 0.0  ;;  %v1461_v43 = vmul.f32 0.1, %v1178_v40  ;;  %4673 = vst [vmem:[#allocation2 + $0x100] sm:$0xff] %v4622_v36   ;;  %v5098_v44 = vpop.f32.mrb[14].mxu0 }
 0x161   : > { %v1511_v46 = vmul.f32 0.1, %v5145_v38  ;;  %v1527_v47 = vsel %vm1399_vm8, %v5097_v35, %v1463_v39  ;;  %vm1400_vm11 = vcmp.ge.f32.partialorder %v5098_v44, 0.0  ;;  %v1464_v48 = vmul.f32 0.1, %v5098_v44  ;;  %v1181_v49 = vpop.f32.mrb[15].mxu0 }
 0x162   : > { %4674 = vst [vmem:[#allocation2 + $0x108] sm:$0xff] %v4627_v41   ;;  %vm1445_vm12 = vcmp.ge.f32.partialorder %v1370_v42, 0.0  ;;  %v5146_v50 = vpop.f32.mrb[14].mxu1  ;;  %v1525_v51 = vsel %vm1397_vm10, %v1178_v40, %v1461_v43  ;;  %vm1398_vm13 = vcmp.ge.f32.partialorder %v1181_v49, 0.0  ;;  %v1462_v52 = vmul.f32 0.1, %v1181_v49 }
 0x163   : > { %v1575_v53 = vsel %vm1447_vm9, %v5145_v38, %v1511_v46  ;;  %v1373_v54 = vpop.f32.mrb[15].mxu1  ;;  %v1528_v55 = vsel %vm1400_vm11, %v5098_v44, %v1464_v48  ;;  %v1509_v56 = vmul.f32 0.1, %v1370_v42  ;;  %vm1448_vm14 = vcmp.ge.f32.partialorder %v5146_v50, 0.0 }
 0x164   : > { %v1512_v57 = vmul.f32 0.1, %v5146_v50  ;;  %v4527_v58 = vpack.c.bf16 %v1528_v55, %v1527_v47  ;;  %v1526_v59 = vsel %vm1398_vm13, %v1181_v49, %v1462_v52  ;;  %vm1446_vm15 = vcmp.ge.f32.partialorder %v1373_v54, 0.0 }
 0x165   : > { %v1510_v60 = vmul.f32 0.1, %v1373_v54  ;;  %v4522_v61 = vpack.c.bf16 %v1526_v59, %v1525_v51  ;;  %v1573_v62 = vsel %vm1445_vm12, %v1370_v42, %v1509_v56 }
 0x166   : > { %v1576_v63 = vsel %vm1448_vm14, %v5146_v50, %v1512_v57  ;;  %4655 = vst [vmem:[#allocation2 + $0x38] sm:$0xff] %v4527_v58   ;;  %v4632_v0 = vpack.c.bf16 %v1573_v62, %v1572_v45  ;;  %v5101_v3 = vpop.f32.mrb[16].mxu0  ;;  %v5165_v4 = vpop.f32.mrb[16].mxu1 }
 0x167   : > { %v4480_v1 = vpack.c.bf16 %v1576_v63, %v1576_v63  ;;  %v1574_v2 = vsel %vm1446_vm15, %v1373_v54, %v1510_v60  ;;  %4654 = vst [vmem:[#allocation2 + $0x30] sm:$0xff] %v4522_v61   ;;  %vm1999_vm0 = vcmp.ge.f32.partialorder %v5165_v4, 0.0  ;;  %v1194_v6 = vpop.f32.mrb[17].mxu0  ;;  %v1966_v7 = vpop.f32.mrb[17].mxu1  ;;  %v2007_v8 = vmul.f32 0.1, %v5165_v4 }
 0x168   : > { %v4637_v5 = vpack.c.bf16 %v1575_v53, %v1574_v2  ;;  %4675 = vst [vmem:[#allocation2 + $0x110] sm:$0xff] %v4632_v0   ;;  %vm1401_vm1 = vcmp.ge.f32.partialorder %v1194_v6, 0.0  ;;  %v1465_v9 = vmul.f32 0.1, %v1194_v6  ;;  %v1467_v10 = vmul.f32 0.1, %v5101_v3 }
 0x169   : > { %1899 = vst [vmem:[#allocation2 + $0x120] sm:$0xf] %v4480_v1  ;;  %v2005_v11 = vmul.f32 0.1, %v1966_v7  ;;  %v5102_v12 = vpop.f32.mrb[18].mxu0  ;;  %v5166_v13 = vpop.f32.mrb[18].mxu1  ;;  %v2015_v14 = vsel %vm1999_vm0, %v5165_v4, %v2007_v8 }
 0x16a   : > { %4676 = vst [vmem:[#allocation2 + $0x118] sm:$0xff] %v4637_v5   ;;  %v1529_v15 = vsel %vm1401_vm1, %v1194_v6, %v1465_v9  ;;  %vm1997_vm2 = vcmp.ge.f32.partialorder %v1966_v7, 0.0  ;;  %v1468_v16 = vmul.f32 0.1, %v5102_v12  ;;  %v1197_v18 = vpop.f32.mrb[19].mxu0  ;;  %v1969_v19 = vpop.f32.mrb[19].mxu1  ;;  %v4483_v20 = vpack.c.bf16 %v2015_v14, %v2015_v14 }
 0x16b   : > { %vm1403_vm3 = vcmp.ge.f32.partialorder %v5101_v3, 0.0  ;;  %v4433_v21 = vpack.c.bf16 %v1529_v15, %v1529_v15  ;;  %vm2000_vm4 = vcmp.ge.f32.partialorder %v5166_v13, 0.0  ;;  %v2008_v22 = vmul.f32 0.1, %v5166_v13  ;;  %v5362_v53 = vld [vmem:[%s6433_s3 + $0x80] sm:$0xff]   ;;  %v5364_v60 = vld [vmem:[%s6433_s3 + $0xc8] sm:$0xff]  }
 0x16c   : > { %vm1402_vm5 = vcmp.ge.f32.partialorder %v1197_v18, 0.0  ;;  %v1466_v23 = vmul.f32 0.1, %v1197_v18  ;;  %2041 = vst [vmem:[#allocation2 + $0x8c] sm:$0xf] %v4483_v20  ;;  %v2013_v24 = vsel %vm1997_vm2, %v1966_v7, %v2005_v11  ;;  %vm1998_vm6 = vcmp.ge.f32.partialorder %v1969_v19, 0.0 }
 0x16d   : > { %1738 = vst [vmem:[#allocation2 + $0x4c] sm:$0xf] %v4433_v21  ;;  %v2006_v25 = vmul.f32 0.1, %v1969_v19  ;;  %v1531_v26 = vsel %vm1403_vm3, %v5101_v3, %v1467_v10  ;;  %v2016_v27 = vsel %vm2000_vm4, %v5166_v13, %v2008_v22  ;;  %vm1404_vm7 = vcmp.ge.f32.partialorder %v5102_v12, 0.0  ;;  %v5947_v1 = vld [vmem:[#allocation2] sm:$0xff]  }
 0x16e   : > { %v1530_v28 = vsel %vm1402_vm5, %v1197_v18, %v1466_v23  ;;  %v5105_v29 = vpop.f32.mrb[20].mxu0  ;;  %v4484_v30 = vpack.c.bf16 %v2016_v27, %v2016_v27  ;;  %v1532_v39 = vsel %vm1404_vm7, %v5102_v12, %v1468_v16  ;;  %v5169_v42 = vpop.f32.mrb[20].mxu1  ;;  %v5367_v7 = vld [vmem:[%s6433_s3 + $0x88] sm:$0xff]   ;;  %v5370_v11 = vld [vmem:[%s6433_s3 + $0xd0] sm:$0xff]   ;;  %v5376_v23 = vld [vmem:[%s6433_s3 + $0xd8] sm:$0xff]  }
 0x16f   : > { %v4532_v31 = vpack.c.bf16 %v1531_v26, %v1530_v28  ;;  %v2014_v32 = vsel %vm1998_vm6, %v1969_v19, %v2006_v25  ;;  %v1210_v33 = vpop.f32.mrb[21].mxu0  ;;  %v1471_v35 = vmul.f32 0.1, %v5105_v29  ;;  %vm1407_vm9 = vcmp.ge.f32.partialorder %v5105_v29, 0.0  ;;  %v1982_v44 = vpop.f32.mrb[21].mxu1  ;;  %v5372_v22 = vld [vmem:[%s6433_s3 + $0x90] sm:$0xff]  }
 0x170   : > { %v4642_v34 = vpack.c.bf16 %v2014_v32, %v2013_v24  ;;  %vm1405_vm8 = vcmp.ge.f32.partialorder %v1210_v33, 0.0  ;;  %v1469_v36 = vmul.f32 0.1, %v1210_v33  ;;  %v5106_v37 = vpop.f32.mrb[22].mxu0  ;;  %2042 = vst [vmem:[#allocation2 + $0x90] sm:$0xf] %v4484_v30 }
 0x171   : > { %4656 = vst [vmem:[#allocation2 + $0x50] sm:$0xff] %v4532_v31   ;;  %v1213_v38 = vpop.f32.mrb[23].mxu0  ;;  %v1535_v45 = vsel %vm1407_vm9, %v5105_v29, %v1471_v35  ;;  %vm1408_vm11 = vcmp.ge.f32.partialorder %v5106_v37, 0.0  ;;  %v1472_v47 = vmul.f32 0.1, %v5106_v37  ;;  %v5170_v49 = vpop.f32.mrb[22].mxu1 }
 0x172   : > { %4677 = vst [vmem:[#allocation2 + $0x40] sm:$0xff] %v4642_v34   ;;  %v1533_v40 = vsel %vm1405_vm8, %v1210_v33, %v1469_v36  ;;  %vm1406_vm10 = vcmp.ge.f32.partialorder %v1213_v38, 0.0  ;;  %v1470_v41 = vmul.f32 0.1, %v1213_v38  ;;  %v1985_v54 = vpop.f32.mrb[23].mxu1  ;;  %vm2001_vm14 = vcmp.ge.f32.partialorder %v1982_v44, 0.0 }
 0x173   : > { %v4537_v43 = vpack.c.bf16 %v1533_v40, %v1532_v39  ;;  %v1536_v57 = vsel %vm1408_vm11, %v5106_v37, %v1472_v47  ;;  %v2009_v61 = vmul.f32 0.1, %v1982_v44  ;;  %vm2002_vm0 = vcmp.ge.f32.partialorder %v1985_v54, 0.0  ;;  %v5967_v27 = vld [vmem:[#allocation2 + $0x8] sm:$0xff]   ;;  %v5378_v34 = vld [vmem:[%s6433_s3 + $0x98] sm:$0xff]   ;;  %v5382_v36 = vld [vmem:[%s6433_s3 + $0xe0] sm:$0xff]  }
 0x174   : > { %v1534_v46 = vsel %vm1406_vm10, %v1213_v38, %v1470_v41  ;;  %v2010_v9 = vmul.f32 0.1, %v1985_v54  ;;  %v5385_v41 = vld [vmem:[%s6433_s3 + $0xa0] sm:$0xff]   ;;  %v5982_v47 = vld [vmem:[#allocation2 + $0x10] sm:$0xff]  }
 0x175   : > { %4657 = vst [vmem:[#allocation2 + $0x58] sm:$0xff] %v4537_v43   ;;  %v4542_v48 = vpack.c.bf16 %v1535_v45, %v1534_v46  ;;  %v2017_v8 = vsel %vm2001_vm14, %v1982_v44, %v2009_v61 }
 0x176   : > { %v5109_v50 = vpop.f32.mrb[24].mxu0  ;;  %v2018_v14 = vsel %vm2002_vm0, %v1985_v54, %v2010_v9  ;;  %v5395_v54 = vld [vmem:[%s6433_s3 + $0xa8] sm:$0xff]  }
 0x177   : > { %4658 = vst [vmem:[#allocation2 + $0x60] sm:$0xff] %v4542_v48   ;;  %vm1411_vm12 = vcmp.ge.f32.partialorder %v5109_v50, 0.0  ;;  %v1475_v51 = vmul.f32 0.1, %v5109_v50  ;;  %v1226_v52 = vpop.f32.mrb[25].mxu0  ;;  %v4647_v19 = vpack.c.bf16 %v2018_v14, %v2017_v8  ;;  %v5392_v48 = vld [vmem:[%s6433_s3 + $0xe8] sm:$0xff]  }
 0x178   : > { %vm1409_vm13 = vcmp.ge.f32.partialorder %v1226_v52, 0.0  ;;  %v1473_v55 = vmul.f32 0.1, %v1226_v52  ;;  %v5110_v56 = vpop.f32.mrb[26].mxu0  ;;  %v5359_v59 = vld [vmem:[#allocation2 + $0x4c] sm:$0xff]  }
 0x179   : > { %v1229_v58 = vpop.f32.mrb[27].mxu0  ;;  %v1539_v62 = vsel %vm1411_vm12, %v5109_v50, %v1475_v51  ;;  %v1476_v3 = vmul.f32 0.1, %v5110_v56  ;;  %3125 = vmatprep.mubr.bf16.mxu1 %v5359_v59  ;;  %vm1412_vm1 = vcmp.ge.f32.partialorder %v5110_v56, 0.0  ;;  %4678 = vst [vmem:[#allocation2 + $0xd8] sm:$0xff] %v4647_v19  }
 0x17a   : > { %v1537_v63 = vsel %vm1409_vm13, %v1226_v52, %v1473_v55  ;;  %vm1410_vm15 = vcmp.ge.f32.partialorder %v1229_v58, 0.0  ;;  %v1474_v0 = vmul.f32 0.1, %v1229_v58  ;;  %3126 = vmatmul.mubr.bf16.vlgmr.msra.gmra.mrb[24].mxu1 %v5947_v1 }
 0x17b   : > { %v4547_v2 = vpack.c.bf16 %v1537_v63, %v1536_v57  ;;  %4796 = vmatpush3.bf16.msra.mxu1 %v5362_v53  ;;  %v1540_v15 = vsel %vm1412_vm1, %v5110_v56, %v1476_v3  ;;  %v5398_v56 = vld [vmem:[%s6433_s3 + $0xf0] sm:$0xff]  }
 0x17c   : > { %v1538_v4 = vsel %vm1410_vm15, %v1229_v58, %v1474_v0  ;;  %v5950_v5 = vld [vmem:[#allocation2 + $0x54] sm:$0xff]   ;;  %4797 = vmatprep.subr.bf16.mxu1 %v5364_v60 }
 0x17d   : > { %4659 = vst [vmem:[#allocation2 + $0x68] sm:$0xff] %v4547_v2   ;;  %v4552_v6 = vpack.c.bf16 %v1539_v62, %v1538_v4  ;;  %3133 = vmatprep.mubr.bf16.mxu1 %v5950_v5  ;;  %v5401_v0 = vld [vmem:[%s6433_s3 + $0xb0] sm:$0xff]   ;;  %v5404_v2 = vld [vmem:[%s6433_s3 + $0xf8] sm:$0xff]  }
 0x17e   : > { %v5113_v10 = vpop.f32.mrb[28].mxu0  ;;  %v5969_v30 = vld [vmem:[#allocation2 + $0x5c] sm:$0xff]  }
 0x17f   : > { %4660 = vst [vmem:[#allocation2 + $0x70] sm:$0xff] %v4552_v6   ;;  %vm1415_vm2 = vcmp.ge.f32.partialorder %v5113_v10, 0.0  ;;  %v1479_v12 = vmul.f32 0.1, %v5113_v10  ;;  %v1242_v13 = vpop.f32.mrb[29].mxu0  ;;  %4798 = vmatpush3.bf16.msra.mxu1 %v5367_v7  ;;  %v6003_v4 = vld [vmem:[#allocation2 + $0x18] sm:$0xff]  }
 0x180   : > { %vm1413_vm3 = vcmp.ge.f32.partialorder %v1242_v13, 0.0  ;;  %v1477_v16 = vmul.f32 0.1, %v1242_v13  ;;  %v5114_v18 = vpop.f32.mrb[30].mxu0  ;;  %4799 = vmatprep.subr.bf16.mxu1 %v5370_v11  ;;  %v5407_v11 = vld [vmem:[%s6433_s3 + $0xb8] sm:$0xff]  }
 0x181   : > { %vm1416_vm4 = vcmp.ge.f32.partialorder %v5114_v18, 0.0  ;;  %v1480_v20 = vmul.f32 0.1, %v5114_v18  ;;  %v1245_v21 = vpop.f32.mrb[31].mxu0  ;;  %v1543_v24 = vsel %vm1415_vm2, %v5113_v10, %v1479_v12  ;;  %v5410_v12 = vld [vmem:[%s6433_s3 + $0x1c0] sm:$0xff]  }
 0x182   : > { %v1541_v25 = vsel %vm1413_vm3, %v1242_v13, %v1477_v16  ;;  %vm1414_vm5 = vcmp.ge.f32.partialorder %v1245_v21, 0.0  ;;  %v1478_v26 = vmul.f32 0.1, %v1245_v21  ;;  %3134 = vmatmul.mubr.bf16.gmra.mrb[28].mxu1 %v5967_v27  ;;  %vm2235_vm2 = vsmask.f32 7424 }
 0x183   : > { %v4557_v28 = vpack.c.bf16 %v1541_v25, %v1540_v15  ;;  %v1544_v29 = vsel %vm1416_vm4, %v5114_v18, %v1480_v20  ;;  %3141 = vmatprep.mubr.bf16.mxu1 %v5969_v30  ;;  %4800 = vmatpush3.bf16.msra.mxu1 %v5372_v22  ;;  %v5530_v15 = vmov 0  }
 0x184   : > { %v4448_v31 = vpack.c.bf16 %v1544_v29, %v1544_v29  ;;  %v1542_v32 = vsel %vm1414_vm5, %v1245_v21, %v1478_v26  ;;  %4801 = vmatprep.subr.bf16.mxu1 %v5376_v23  ;;  %v5987_v50 = vld [vmem:[#allocation2 + $0x64] sm:$0xff]   ;;  %2061 = vst [vmem:[#allocation2 + $0x48] sm:$0xf] %v5530_v15 }
 0x185   : > { %4661 = vst [vmem:[#allocation2 + $0x78] sm:$0xff] %v4557_v28   ;;  %v4562_v33 = vpack.c.bf16 %v1543_v24, %v1542_v32  ;;  %v6022_v32 = vld [vmem:[#allocation2 + $0x20] sm:$0xff]  }
 0x186   : > { %1753 = vst [vmem:[#allocation2 + $0x88] sm:$0xf] %v4448_v31  ;;  %v5117_v35 = vpop.f32.mrb[32].mxu0  ;;  %v6005_v8 = vld [vmem:[#allocation2 + $0x6c] sm:$0xff]  }
 0x187   : > { %4662 = vst [vmem:[#allocation2 + $0x80] sm:$0xff] %v4562_v33   ;;  %vm1419_vm6 = vcmp.ge.f32.partialorder %v5117_v35, 0.0  ;;  %v1483_v37 = vmul.f32 0.1, %v5117_v35  ;;  %v1258_v38 = vpop.f32.mrb[33].mxu0  ;;  %4802 = vmatpush3.bf16.msra.mxu1 %v5378_v34 }
 0x188   : > { %vm1417_vm7 = vcmp.ge.f32.partialorder %v1258_v38, 0.0  ;;  %v1481_v39 = vmul.f32 0.1, %v1258_v38  ;;  %v5118_v40 = vpop.f32.mrb[34].mxu0  ;;  %4803 = vmatprep.subr.bf16.mxu1 %v5382_v36 }
 0x189   : > { %v1547_v42 = vsel %vm1419_vm6, %v5117_v35, %v1483_v37  ;;  %vm1420_vm8 = vcmp.ge.f32.partialorder %v5118_v40, 0.0  ;;  %v1484_v43 = vmul.f32 0.1, %v5118_v40  ;;  %v1261_v44 = vpop.f32.mrb[35].mxu0 }
 0x18a   : > { %v1545_v45 = vsel %vm1417_vm7, %v1258_v38, %v1481_v39  ;;  %vm1418_vm9 = vcmp.ge.f32.partialorder %v1261_v44, 0.0  ;;  %v1482_v46 = vmul.f32 0.1, %v1261_v44  ;;  %3142 = vmatmul.mubr.bf16.gmra.mrb[32].mxu1 %v5982_v47 }
 0x18b   : > { %v1548_v49 = vsel %vm1420_vm8, %v5118_v40, %v1484_v43  ;;  %3149 = vmatprep.mubr.bf16.mxu1 %v5987_v50  ;;  %4804 = vmatpush3.bf16.msra.mxu1 %v5385_v41  ;;  %v5393_v40 = vld [vmem:[#allocation2 + $0xe4] sm:$0xff]  }
 0x18c   : > { %v4572_v51 = vpack.c.bf16 %v1548_v49, %v1547_v42  ;;  %v1546_v52 = vsel %vm1418_vm9, %v1261_v44, %v1482_v46  ;;  %4805 = vmatprep.subr.bf16.mxu1 %v5392_v48  ;;  %v6024_v36 = vld [vmem:[#allocation2 + $0x74] sm:$0xff]   ;;  %v5417_v43 = vld [vmem:[%s6433_s3 + $0x208] sm:$0xff]  }
 0x18d   : > { %v4567_v53 = vpack.c.bf16 %v1546_v52, %v1545_v45 }
 0x18e   : > { %4663 = vst [vmem:[#allocation2 + $0xa0] sm:$0xff] %v4572_v51   ;;  %v5121_v55 = vpop.f32.mrb[36].mxu0 }
 0x18f   : > { %4568 = vst [vmem:[#allocation2 + $0x98] sm:$0xff] %v4567_v53   ;;  %vm1423_vm10 = vcmp.ge.f32.partialorder %v5121_v55, 0.0  ;;  %v1487_v57 = vmul.f32 0.1, %v5121_v55  ;;  %v1274_v58 = vpop.f32.mrb[37].mxu0  ;;  %4806 = vmatpush3.bf16.msra.mxu1 %v5395_v54 }
 0x190   : > { %vm1421_vm11 = vcmp.ge.f32.partialorder %v1274_v58, 0.0  ;;  %v1485_v59 = vmul.f32 0.1, %v1274_v58  ;;  %v5122_v60 = vpop.f32.mrb[38].mxu0  ;;  %4807 = vmatprep.subr.bf16.mxu1 %v5398_v56 }
 0x191   : > { %v1551_v61 = vsel %vm1423_vm10, %v5121_v55, %v1487_v57  ;;  %vm1424_vm12 = vcmp.ge.f32.partialorder %v5122_v60, 0.0  ;;  %v1488_v62 = vmul.f32 0.1, %v5122_v60  ;;  %v1277_v63 = vpop.f32.mrb[39].mxu0 }
 0x192   : > { %v1549_v3 = vsel %vm1421_vm11, %v1274_v58, %v1485_v59  ;;  %vm1422_vm13 = vcmp.ge.f32.partialorder %v1277_v63, 0.0  ;;  %v1486_v6 = vmul.f32 0.1, %v1277_v63  ;;  %3150 = vmatmul.mubr.bf16.gmra.mrb[36].mxu1 %v6003_v4 }
 0x193   : > { %v1552_v7 = vsel %vm1424_vm12, %v5122_v60, %v1488_v62  ;;  %3157 = vmatprep.mubr.bf16.mxu1 %v6005_v8  ;;  %4808 = vmatpush3.bf16.msra.mxu1 %v5401_v0 }
 0x194   : > { %v4582_v9 = vpack.c.bf16 %v1552_v7, %v1551_v61  ;;  %v1550_v10 = vsel %vm1422_vm13, %v1277_v63, %v1486_v6  ;;  %4809 = vmatprep.subr.bf16.mxu1 %v5404_v2  ;;  %v6041_v63 = vld [vmem:[#allocation2 + $0x28] sm:$0xff]   ;;  %v6043_v6 = vld [vmem:[#allocation2 + $0x7c] sm:$0xff]  }
 0x195   : > { %v4577_v13 = vpack.c.bf16 %v1550_v10, %v1549_v3  ;;  %v6015_v14 = vld [vmem:[#allocation2 + $0xa0] sm:$0xff]  }
 0x196   : > { %4665 = vst [vmem:[#allocation2 + $0xb0] sm:$0xff] %v4582_v9   ;;  %v5125_v16 = vpop.f32.mrb[40].mxu0  ;;  %v6017_v18 = vld [vmem:[#allocation2 + $0x98] sm:$0xff]   ;;  %v2419_v20 = vshll.u32 %v6015_v14, 16  ;;  %v2423_v38 = vshrl.u32 %v6015_v14, 16  ;;  %v5421_v9 = vld [vmem:[%s6433_s3 + $0x210] sm:$0xff]  }
 0x197   : > { %4664 = vst [vmem:[#allocation2 + $0xa8] sm:$0xff] %v4577_v13   ;;  %vm1427_vm14 = vcmp.ge.f32.partialorder %v5125_v16, 0.0  ;;  %v1491_v19 = vmul.f32 0.1, %v5125_v16  ;;  %v1290_v21 = vpop.f32.mrb[41].mxu0  ;;  %v2412_v22 = vshrl.u32 %v6017_v18, 16  ;;  %4810 = vmatpush3.bf16.msra.mxu1 %v5407_v11 }
 0x198   : > { %v2414_v23 = vshll.u32 %v6017_v18, 16  ;;  %vm1425_vm15 = vcmp.ge.f32.partialorder %v1290_v21, 0.0  ;;  %v1489_v24 = vmul.f32 0.1, %v1290_v21  ;;  %v5126_v25 = vpop.f32.mrb[42].mxu0  ;;  %v2421_v28 = vrot.slane %v2419_v20, 1  ;;  %4923 = vmatprep.subr.bf16.mxu1 %v5410_v12 }
 0x199   : > { %v1555_v26 = vsel %vm1427_vm14, %v5125_v16, %v1491_v19  ;;  %vm1428_vm0 = vcmp.ge.f32.partialorder %v5126_v25, 0.0  ;;  %v1492_v29 = vmul.f32 0.1, %v5126_v25  ;;  %v1293_v31 = vpop.f32.mrb[43].mxu0  ;;  %v5399_v11 = vld [vmem:[#allocation2 + $0xec] sm:$0xff]  }
 0x19a   : > { %v2416_v33 = vrot.slane %v2414_v23, 1  ;;  %v1553_v34 = vsel %vm1425_vm15, %v1290_v21, %v1489_v24  ;;  %vm1426_vm1 = vcmp.ge.f32.partialorder %v1293_v31, 0.0  ;;  %v1490_v35 = vmul.f32 0.1, %v1293_v31  ;;  %3158 = vmatmul.mubr.bf16.gmra.mrb[40].mxu1 %v6022_v32  ;;  %v5423_v21 = vld [vmem:[%s6433_s3 + $0x218] sm:$0xff]   ;;  %v6059_v23 = vld [vmem:[#allocation2 + $0x30] sm:$0xff]  }
 0x19b   : > { %v1556_v37 = vsel %vm1428_vm0, %v5126_v25, %v1492_v29  ;;  %3165 = vmatprep.mubr.bf16.mxu1 %v6024_v36  ;;  %v2425_v51 = vor.u32 %v2423_v38, %v2421_v28  ;;  %v5427_v29 = vld [vmem:[%s6433_s3 + $0x220] sm:$0xff]   ;;  %v5429_v38 = vld [vmem:[%s6433_s3 + $0x228] sm:$0xff]  }
 0x19c   : > { %v2417_v39 = vor.u32 %v2416_v33, %v2412_v22  ;;  %v4592_v41 = vpack.c.bf16 %v1556_v37, %v1555_v26  ;;  %v1554_v42 = vsel %vm1426_vm1, %v1293_v31, %v1490_v35  ;;  %v5405_v31 = vld [vmem:[#allocation2 + $0xf4] sm:$0xff]   ;;  %v2239_v37 = vshll.u32 %v5947_v1, 16 }
 0x19d   : > { %v4587_v44 = vpack.c.bf16 %v1554_v42, %v1553_v34  ;;  %v6032_v45 = vld [vmem:[#allocation2 + $0xb0] sm:$0xff]  }
 0x19e   : > { %v2422_v46 = vsel %vm2235_vm2, %v2417_v39, %v2421_v28  ;;  %4667 = vst [vmem:[#allocation2 + $0xc0] sm:$0xff] %v4592_v41   ;;  %v6035_v48 = vld [vmem:[#allocation2 + $0xa8] sm:$0xff]   ;;  %v5129_v49 = vpop.f32.mrb[44].mxu0  ;;  %v2435_v53 = vshll.u32 %v6032_v45, 16  ;;  %v2439_v20 = vshrl.u32 %v6032_v45, 16  ;;  %v6077_v39 = vld [vmem:[#allocation2 + $0x38] sm:$0xff]  }
 0x19f   : > { %3319 = vmatprep.mubr.bf16.mxu0 %v2422_v46  ;;  %4666 = vst [vmem:[#allocation2 + $0xb8] sm:$0xff] %v4587_v44   ;;  %vm1431_vm3 = vcmp.ge.f32.partialorder %v5129_v49, 0.0  ;;  %v1495_v52 = vmul.f32 0.1, %v5129_v49  ;;  %v1306_v54 = vpop.f32.mrb[45].mxu0  ;;  %v2427_v55 = vshll.u32 %v6035_v48, 16 }
 0x1a0   : > { %3320 = vmatmul.mubr.bf16.vlgmr.msra.gmra.mrb[48].mxu0 %v5393_v40  ;;  %v2431_v56 = vshrl.u32 %v6035_v48, 16  ;;  %vm1429_vm4 = vcmp.ge.f32.partialorder %v1306_v54, 0.0  ;;  %v1493_v57 = vmul.f32 0.1, %v1306_v54  ;;  %v5130_v58 = vpop.f32.mrb[46].mxu0  ;;  %v2437_v60 = vrot.slane %v2435_v53, 1 }
 0x1a1   : > { %v1559_v59 = vsel %vm1431_vm3, %v5129_v49, %v1495_v52  ;;  %vm1432_vm5 = vcmp.ge.f32.partialorder %v5130_v58, 0.0  ;;  %v1496_v61 = vmul.f32 0.1, %v5130_v58  ;;  %v1309_v62 = vpop.f32.mrb[47].mxu0  ;;  %5172 = vmatpush3.bf16.msra.mxu0 %v5930_v17  ;;  %v2429_v0 = vrot.slane %v2427_v55, 1  ;;  %v6063_v28 = vld [vmem:[#allocation2 + $0x84] sm:$0xff]  }
 0x1a2   : > { %v1557_v2 = vsel %vm1429_vm4, %v1306_v54, %v1493_v57  ;;  %vm1430_vm6 = vcmp.ge.f32.partialorder %v1309_v62, 0.0  ;;  %v1494_v3 = vmul.f32 0.1, %v1309_v62  ;;  %5173 = vmatprep.subr.bf16.mxu0 %v5417_v43  ;;  %3166 = vmatmul.mubr.bf16.gmra.mrb[44].mxu1 %v6041_v63  ;;  %v2441_v24 = vor.u32 %v2439_v20, %v2437_v60  ;;  %v5433_v44 = vld [vmem:[%s6433_s3 + $0x230] sm:$0xff]   ;;  %v5409_v46 = vld [vmem:[#allocation2 + $0xfc] sm:$0xff]  }
 0x1a3   : > { %v1560_v7 = vsel %vm1432_vm5, %v5130_v58, %v1496_v61  ;;  %v2430_v10 = vsel %vm2235_vm2, %v2425_v51, %v2429_v0  ;;  %v2433_v17 = vor.u32 %v2431_v56, %v2429_v0  ;;  %3173 = vmatprep.mubr.bf16.mxu1 %v6043_v6  ;;  %v2237_v49 = vshrl.u32 %v5947_v1, 16  ;;  %v5435_v56 = vld [vmem:[%s6433_s3 + $0x238] sm:$0xff]   ;;  %v5411_v1 = vld [vmem:[%s6433_s3 + $0x180] sm:$0xff]  }
 0x1a4   : > { %v4602_v12 = vpack.c.bf16 %v1560_v7, %v1559_v59  ;;  %v1558_v13 = vsel %vm1430_vm6, %v1309_v62, %v1494_v3  ;;  %3327 = vmatprep.mubr.bf16.mxu0 %v2430_v10  ;;  %v2244_v51 = vshll.u32 %v5967_v27, 16  ;;  %v2252_v62 = vshll.u32 %v5982_v47, 16  ;;  %v5414_v0 = vld [vmem:[#allocation2 + $0x104] sm:$0xff]   ;;  %v5420_v7 = vld [vmem:[%s6433_s3 + $0x1d0] sm:$0xff]  }
 0x1a5   : > { %v4597_v15 = vpack.c.bf16 %v1558_v13, %v1557_v2  ;;  %v2438_v16 = vsel %vm2235_vm2, %v2433_v17, %v2437_v60  ;;  %5174 = vmatpush3.bf16.msra.mxu0 %v5417_v43  ;;  %v6061_v26 = vld [vmem:[#allocation2 + $0xc0] sm:$0xff]   ;;  %v2241_v43 = vrot.slane %v2239_v37, 1  ;;  %v5416_v2 = vld [vmem:[%s6433_s3 + $0x188] sm:$0xff]   ;;  %v5430_v20 = vld [vmem:[#allocation2 + $0xd8] ss:$0 sps:$4 sm:$0x11]  }
 0x1a6   : > { %4669 = vst [vmem:[#allocation2 + $0xd0] sm:$0xff] %v4602_v12   ;;  %v6052_v19 = vld [vmem:[#allocation2 + $0xb8] sm:$0xff]   ;;  %5175 = vmatprep.subr.bf16.mxu0 %v5421_v9  ;;  %v2451_v35 = vshll.u32 %v6061_v26, 16  ;;  %v2455_v53 = vshrl.u32 %v6061_v26, 16  ;;  %v2246_v57 = vrot.slane %v2244_v51, 1  ;;  %v2254_v17 = vrot.slane %v2252_v62, 1 }
 0x1a7   : > { %4668 = vst [vmem:[#allocation2 + $0xc8] sm:$0xff] %v4597_v15   ;;  %v2443_v22 = vshll.u32 %v6052_v19, 16  ;;  %v2447_v34 = vshrl.u32 %v6052_v19, 16  ;;  %v2242_v55 = vor.u32 %v2241_v43, %v2237_v49  ;;  %v5422_v12 = vld [vmem:[%s6433_s3 + $0x190] sm:$0xff]   ;;  %v5436_v43 = vld [vmem:[%s6433_s3 + $0x1e8] sm:$0xff]  }
 0x1a8   : > { %3328 = vmatmul.mubr.bf16.gmra.mrb[52].mxu0 %v5399_v11  ;;  %v2453_v41 = vrot.slane %v2451_v35, 1  ;;  %v2248_v11 = vshrl.u32 %v5967_v27, 16  ;;  %v5432_v35 = vld [vmem:[%s6433_s3 + $0x1e0] sm:$0xff]   ;;  %v5425_v49 = vld [vmem:[#allocation2 + $0x114] sm:$0xff]   ;;  %v5437_v51 = vld [vmem:[%s6433_s3 + $0x1a8] sm:$0xff]  }
 0x1a9   : > { %3335 = vmatprep.mubr.bf16.mxu0 %v2438_v16  ;;  %v2445_v25 = vrot.slane %v2443_v22, 1  ;;  %5176 = vmatpush3.bf16.msra.mxu0 %v5421_v9  ;;  %v2247_v61 = vsel %vm2235_vm2, %v2242_v55, %v2246_v57  ;;  %v5426_v16 = vld [vmem:[%s6433_s3 + $0x1d8] sm:$0xff]   ;;  %v5419_v22 = vld [vmem:[#allocation2 + $0x10c] sm:$0xff]  }
 0x1aa   : > { %5177 = vmatprep.subr.bf16.mxu0 %v5423_v21  ;;  %3174 = vmatmul.mubr.bf16.gmra.mrb[48].mxu1 %v6059_v23  ;;  %v2457_v58 = vor.u32 %v2455_v53, %v2453_v41  ;;  %v5438_v53 = vld [vmem:[%s6433_s3 + $0x1f0] sm:$0xff]  }
 0x1ab   : > { %3181 = vmatprep.mubr.bf16.mxu1 %v6063_v28  ;;  %v2446_v33 = vsel %vm2235_vm2, %v2441_v24, %v2445_v25  ;;  %v2449_v40 = vor.u32 %v2447_v34, %v2445_v25  ;;  %v2256_v24 = vshrl.u32 %v5982_v47, 16  ;;  %v2260_v25 = vshll.u32 %v6003_v4, 16 }
 0x1ac   : > { %v2475_v34 = vshll.u32 %v5430_v20, 16 }
 0x1ad   : > { %5178 = vmatpush3.bf16.msra.mxu0 %v5423_v21  ;;  %v2454_v52 = vsel %vm2235_vm2, %v2449_v40, %v2453_v41  ;;  %v6100_v60 = vld [vmem:[#allocation2 + $0xd0] sm:$0xff]   ;;  %v2262_v37 = vrot.slane %v2260_v25, 1 }
 0x1ae   : > { %5179 = vmatprep.subr.bf16.mxu0 %v5427_v29  ;;  %v6079_v42 = vld [vmem:[#allocation2 + $0xc8] sm:$0xff]   ;;  %v2467_v10 = vshll.u32 %v6100_v60, 16  ;;  %v2477_v41 = vrot.slane %v2475_v34, 1 }
 0x1af   : > { %v2459_v54 = vshll.u32 %v6079_v42, 16  ;;  %v2463_v9 = vshrl.u32 %v6079_v42, 16 }
 0x1b0   : > { %3336 = vmatmul.mubr.bf16.gmra.mrb[56].mxu0 %v5405_v31  ;;  %v2469_v15 = vrot.slane %v2467_v10, 1 }
 0x1b1   : > { %3343 = vmatprep.mubr.bf16.mxu0 %v2446_v33  ;;  %5180 = vmatpush3.bf16.msra.mxu0 %v5427_v29  ;;  %v2461_v59 = vrot.slane %v2459_v54, 1  ;;  %v5428_v29 = vld [vmem:[%s6433_s3 + $0x198] sm:$0xff]   ;;  %v2471_v33 = vshrl.u32 %v6100_v60, 16  ;;  %v2264_v54 = vshrl.u32 %v6003_v4, 16 }
 0x1b2   : > { %5181 = vmatprep.subr.bf16.mxu0 %v5429_v38  ;;  %3182 = vmatmul.mubr.bf16.gmra.mrb[52].mxu1 %v6077_v39 }
 0x1b3   : > { %3222 = vmatprep.mubr.bf16.mxu1 %v6017_v18  ;;  %v5415_v18 = vld [vmem:[%s6433_s3 + $0x1c8] sm:$0xff]   ;;  %v2462_v3 = vsel %vm2235_vm2, %v2457_v58, %v2461_v59  ;;  %v2465_v13 = vor.u32 %v2463_v9, %v2461_v59  ;;  %v2473_v40 = vor.u32 %v2471_v33, %v2469_v15  ;;  %v2272_v58 = vshrl.u32 %v6022_v32, 16 }
 0x1b4   : > { %v2276_v59 = vshll.u32 %v6041_v63, 16 }
 0x1b5   : > { %5182 = vmatpush3.bf16.msra.mxu0 %v5429_v38  ;;  %v2470_v31 = vsel %vm2235_vm2, %v2465_v13, %v2469_v15  ;;  %v5434_v38 = vld [vmem:[%s6433_s3 + $0x1a0] sm:$0xff]  }
 0x1b6   : > { %5183 = vmatprep.subr.bf16.mxu0 %v5433_v44  ;;  %v5441_v13 = vld [vmem:[#allocation2 + $0x40] ss:$0 sps:$4 sm:$0x11]  }
 0x1b7   : > { %v2300_v20 = vshll.u32 %v5441_v13, 16 }
 0x1b8   : > { %3344 = vmatmul.mubr.bf16.gmra.mrb[60].mxu0 %v5409_v46  ;;  %v2268_v46 = vshll.u32 %v6022_v32, 16 }
 0x1b9   : > { %3351 = vmatprep.mubr.bf16.mxu0 %v2454_v52  ;;  %5184 = vmatpush3.bf16.msra.mxu0 %v5433_v44  ;;  %v2478_v52 = vsel %vm2235_vm2, %v2473_v40, %v2477_v41  ;;  %v2302_v25 = vrot.slane %v2300_v20, 1 }
 0x1ba   : > { %5185 = vmatprep.subr.bf16.mxu0 %v5435_v56  ;;  %3223 = vmatmul.mubr.bf16.vlgmr.msra.gmra.mrb[56].mxu1 %v2247_v61  ;;  %v2270_v55 = vrot.slane %v2268_v46, 1  ;;  %v5442_v61 = vld [vmem:[%s6433_s3 + $0x1b8] sm:$0xff]  }
 0x1bb   : > { %4924 = vmatpush3.bf16.msra.mxu1 %v5411_v1  ;;  %3230 = vmatprep.mubr.bf16.mxu1 %v6015_v14  ;;  %v2250_v14 = vor.u32 %v2248_v11, %v2246_v57  ;;  %v5440_v57 = vld [vmem:[%s6433_s3 + $0x1f8] sm:$0xff]   ;;  %v5443_v11 = vld [vmem:[#allocation2 + $0x40] sm:$0xff]  }
 0x1bc   : > { %4925 = vmatprep.subr.bf16.mxu1 %v5415_v18  ;;  %v5431_v18 = vld [vmem:[#allocation2 + $0x11c] sm:$0xff]   ;;  %v2274_v62 = vor.u32 %v2272_v58, %v2270_v55  ;;  %v5462_v58 = vld [vmem:[%s5774_s10 + $0xc0] sm:$0xff]  }
 0x1bd   : > { %5186 = vmatpush3.bf16.msra.mxu0 %v5435_v56  ;;  %v2255_v21 = vsel %vm2235_vm2, %v2250_v14, %v2254_v17  ;;  %v2266_v56 = vor.u32 %v2264_v54, %v2262_v37  ;;  %v2292_v14 = vshll.u32 %v6077_v39, 16  ;;  %v5458_v54 = vld [vmem:[%s6434_s4 + $0x70] sm:$0xff]  }
 0x1bf   : > { %4926 = vmatpush3.bf16.msra.mxu1 %v5416_v2  ;;  %v2271_v1 = vsel %vm2235_vm2, %v2266_v56, %v2270_v55  ;;  %v2294_v15 = vrot.slane %v2292_v14, 1  ;;  %v5459_v55 = vld [vmem:[%s6434_s4 + $0x30] sm:$0xff]  }
 0x1c0   : > { %3352 = vmatmul.mubr.bf16.gmra.mrb[64].mxu0 %v5414_v0  ;;  %4927 = vmatprep.subr.bf16.mxu1 %v5420_v7  ;;  %v2278_v0 = vrot.slane %v2276_v59, 1 }
 0x1c1   : > { %3359 = vmatprep.mubr.bf16.mxu0 %v2462_v3  ;;  %v2284_v3 = vshll.u32 %v6059_v23, 16 }
 0x1c2   : > { %3231 = vmatmul.mubr.bf16.gmra.mrb[60].mxu1 %v2255_v21  ;;  %v2279_v2 = vsel %vm2235_vm2, %v2274_v62, %v2278_v0 }
 0x1c3   : > { %3238 = vmatprep.mubr.bf16.mxu1 %v6035_v48  ;;  %4928 = vmatpush3.bf16.msra.mxu1 %v5422_v12  ;;  %v2258_v48 = vor.u32 %v2256_v24, %v2254_v17  ;;  %v2286_v7 = vrot.slane %v2284_v3, 1  ;;  %v2288_v17 = vshrl.u32 %v6059_v23, 16 }
 0x1c4   : > { %4929 = vmatprep.subr.bf16.mxu1 %v5426_v16 }
 0x1c5   : > { %v2263_v44 = vsel %vm2235_vm2, %v2258_v48, %v2262_v37  ;;  %v2290_v12 = vor.u32 %v2288_v17, %v2286_v7 }
 0x1c7   : > { %4930 = vmatpush3.bf16.msra.mxu1 %v5428_v29  ;;  %v2295_v16 = vsel %vm2235_vm2, %v2290_v12, %v2294_v15  ;;  %v2507_v29 = vshrl.u32 %v5443_v11, 16 }
 0x1c8   : > { %3360 = vmatmul.mubr.bf16.gmra.mrb[68].mxu0 %v5419_v22  ;;  %4931 = vmatprep.subr.bf16.mxu1 %v5432_v35  ;;  %v2296_v22 = vshrl.u32 %v6077_v39, 16 }
 0x1c9   : > { %3367 = vmatprep.mubr.bf16.mxu0 %v2470_v31 }
 0x1ca   : > { %3239 = vmatmul.mubr.bf16.gmra.mrb[64].mxu1 %v2263_v44 }
 0x1cb   : > { %3246 = vmatprep.mubr.bf16.mxu1 %v6032_v45  ;;  %4932 = vmatpush3.bf16.msra.mxu1 %v5434_v38  ;;  %v5439_v45 = vld [vmem:[%s6433_s3 + $0x1b0] sm:$0xff]  }
 0x1cc   : > { %4933 = vmatprep.subr.bf16.mxu1 %v5436_v43 }
 0x1cf   : > { %4934 = vmatpush3.bf16.msra.mxu1 %v5437_v51 }
 0x1d0   : > { %3368 = vmatmul.mubr.bf16.gmra.mrb[72].mxu0 %v5425_v49  ;;  %4935 = vmatprep.subr.bf16.mxu1 %v5438_v53  ;;  %v5456_v49 = vld [vmem:[%s6434_s4 + $0x68] sm:$0xff]  }
 0x1d1   : > { %3375 = vmatprep.mubr.bf16.mxu0 %v2478_v52  ;;  %v5457_v53 = vld [vmem:[%s6434_s4 + $0x28] sm:$0xff]  }
 0x1d2   : > { %3247 = vmatmul.mubr.bf16.gmra.mrb[68].mxu1 %v2271_v1 }
 0x1d3   : > { %3254 = vmatprep.mubr.bf16.mxu1 %v6052_v19  ;;  %4936 = vmatpush3.bf16.msra.mxu1 %v5439_v45  ;;  %v2280_v19 = vshrl.u32 %v6041_v63, 16  ;;  %v5460_v45 = vld [vmem:[%s6434_s4 + $0x78] sm:$0xff]  }
 0x1d4   : > { %4937 = vmatprep.subr.bf16.mxu1 %v5440_v57 }
 0x1d5   : > { %v2282_v9 = vor.u32 %v2280_v19, %v2278_v0 }
 0x1d7   : > { %4938 = vmatpush3.bf16.msra.mxu1 %v5442_v61  ;;  %v2287_v10 = vsel %vm2235_vm2, %v2282_v9, %v2286_v7  ;;  %v5461_v61 = vld [vmem:[%s6434_s4 + $0x38] sm:$0xff]  }
 0x1d8   : > { %3376 = vmatmul.mubr.bf16.gmra.mrb[76].mxu0 %v5431_v18 }
 0x1d9   : > { %5187 = vmatprep.mubr.bf16.mxu0 %v2255_v21  ;;  %v5444_v21 = vld [vmem:[#allocation2 + $0x48] ss:$0 sps:$4 sm:$0x11]  }
 0x1da   : > { %3255 = vmatmul.mubr.bf16.gmra.mrb[72].mxu1 %v2279_v2  ;;  %v2511_v31 = vshll.u32 %v5444_v21, 16 }
 0x1db   : > { %3262 = vmatprep.mubr.bf16.mxu1 %v6061_v26  ;;  %v2503_v26 = vshll.u32 %v5443_v11, 16 }
 0x1dc   : > { %v2513_v48 = vrot.slane %v2511_v31, 1 }
 0x1dd   : > { %v2505_v24 = vrot.slane %v2503_v26, 1 }
 0x1df   : > { %v2509_v35 = vor.u32 %v2507_v29, %v2505_v24 }
 0x1e0   : > { %5188 = vmatmul.mubr.bf16.vlgmr.msra.gmra.mrb[80].mxu0 %v2263_v44 }
 0x1e1   : > { %5191 = vmatprep.mubr.bf16.mxu0 %v2271_v1  ;;  %v2514_v37 = vsel %vm2235_vm2, %v2509_v35, %v2513_v48 }
 0x1e2   : > { %3263 = vmatmul.mubr.bf16.gmra.mrb[76].mxu1 %v2287_v10 }
 0x1e3   : > { %3270 = vmatprep.mubr.bf16.mxu1 %v6079_v42  ;;  %v2298_v42 = vor.u32 %v2296_v22, %v2294_v15 }
 0x1e5   : > { %v2506_v33 = vsel %vm2235_vm2, %v2298_v42, %v2505_v24  ;;  %v2303_v34 = vsel %vm2235_vm2, %v2298_v42, %v2302_v25 }
 0x1e8   : > { %5192 = vmatmul.mubr.bf16.gmra.mrb[84].mxu0 %v2279_v2 }
 0x1e9   : > { %5195 = vmatprep.mubr.bf16.mxu0 %v2287_v10 }
 0x1ea   : > { %3271 = vmatmul.mubr.bf16.gmra.mrb[80].mxu1 %v2295_v16 }
 0x1eb   : > { %3278 = vmatprep.mubr.bf16.mxu1 %v6100_v60 }
 0x1f0   : > { %5196 = vmatmul.mubr.bf16.gmra.mrb[88].mxu0 %v2295_v16 }
 0x1f1   : > { %5199 = vmatprep.mubr.bf16.mxu0 %v2506_v33 }
 0x1f2   : > { %3279 = vmatmul.mubr.bf16.gmra.mrb[84].mxu1 %v2303_v34 }
 0x1f3   : > { %3416 = vmatprep.mubr.bf16.mxu1 %v5950_v5  ;;  %v5445_v5 = vld [vmem:[#allocation2 + $0x8c] sm:$0xff]  }
 0x1f8   : > { %5200 = vmatmul.mubr.bf16.gmra.mrb[92].mxu0 %v2514_v37 }
 0x1f9   : > { %3859 = vmatprep.mubr.bf16.mxu0 %v5462_v58 }
 0x1fa   : > { %3417 = vmatmul.mubr.bf16.vlgmr.msra.gmra.mrb[88].mxu1 %v5967_v27  ;;  %v5446_v27 = vld [vmem:[%s6434_s4 + $0x40] sm:$0xff]  }
 0x1fb   : > { %3424 = vmatprep.mubr.bf16.mxu1 %v5969_v30  ;;  %v5447_v30 = vld [vmem:[%s6434_s4] sm:$0xff]   ;;  %5003 = vmatprep.subr.bf16.mxu0 %v5446_v27 }
 0x1fc   : > { %5004 = vmatpush3.bf16.msra.mxu0 %v5447_v30 }
 0x202   : > { %3425 = vmatmul.mubr.bf16.gmra.mrb[92].mxu1 %v5982_v47  ;;  %v5448_v47 = vld [vmem:[%s6434_s4 + $0x48] sm:$0xff]  }
 0x203   : > { %3432 = vmatprep.mubr.bf16.mxu1 %v5987_v50  ;;  %5005 = vmatprep.subr.bf16.mxu0 %v5448_v47  ;;  %v5449_v50 = vld [vmem:[%s6434_s4 + $0x8] sm:$0xff]  }
 0x204   : > { %5006 = vmatpush3.bf16.msra.mxu0 %v5449_v50 }
 0x20a   : > { %3433 = vmatmul.mubr.bf16.gmra.mrb[96].mxu1 %v6003_v4  ;;  %v5450_v4 = vld [vmem:[%s6434_s4 + $0x50] sm:$0xff]  }
 0x20b   : > { %3440 = vmatprep.mubr.bf16.mxu1 %v6005_v8  ;;  %v5451_v8 = vld [vmem:[%s6434_s4 + $0x10] sm:$0xff]   ;;  %5007 = vmatprep.subr.bf16.mxu0 %v5450_v4 }
 0x20c   : > { %5008 = vmatpush3.bf16.msra.mxu0 %v5451_v8 }
 0x212   : > { %3441 = vmatmul.mubr.bf16.gmra.mrb[100].mxu1 %v6022_v32  ;;  %v5452_v32 = vld [vmem:[%s6434_s4 + $0x58] sm:$0xff]  }
 0x213   : > { %3448 = vmatprep.mubr.bf16.mxu1 %v6024_v36  ;;  %5009 = vmatprep.subr.bf16.mxu0 %v5452_v32  ;;  %v5453_v36 = vld [vmem:[%s6434_s4 + $0x18] sm:$0xff]  }
 0x214   : > { %5010 = vmatpush3.bf16.msra.mxu0 %v5453_v36 }
 0x21a   : > { %3449 = vmatmul.mubr.bf16.gmra.mrb[104].mxu1 %v6041_v63  ;;  %v5454_v63 = vld [vmem:[%s6434_s4 + $0x60] sm:$0xff]  }
 0x21b   : > { %3456 = vmatprep.mubr.bf16.mxu1 %v6043_v6  ;;  %5011 = vmatprep.subr.bf16.mxu0 %v5454_v63 }
 0x222   : > { %3457 = vmatmul.mubr.bf16.gmra.mrb[108].mxu1 %v6059_v23  ;;  %v5455_v23 = vld [vmem:[%s6434_s4 + $0x20] sm:$0xff]  }
 0x223   : > { %3464 = vmatprep.mubr.bf16.mxu1 %v6063_v28  ;;  %5012 = vmatpush3.bf16.msra.mxu0 %v5455_v23 }
 0x224   : > { %5013 = vmatprep.subr.bf16.mxu0 %v5456_v49 }
 0x227   : > { %5014 = vmatpush3.bf16.msra.mxu0 %v5457_v53 }
 0x228   : > { %5015 = vmatprep.subr.bf16.mxu0 %v5458_v54 }
 0x22a   : > { %3465 = vmatmul.mubr.bf16.gmra.mrb[112].mxu1 %v6077_v39 }
 0x22b   : > { %3472 = vmatprep.mubr.bf16.mxu1 %v5445_v5  ;;  %5016 = vmatpush3.bf16.msra.mxu0 %v5459_v55 }
 0x22c   : > { %5017 = vmatprep.subr.bf16.mxu0 %v5460_v45 }
 0x22f   : > { %5018 = vmatpush3.bf16.msra.mxu0 %v5461_v61 }
 0x232   : > { %3473 = vmatmul.mubr.bf16.gmra.mrb[116].mxu1 %v5443_v11 }
 0x24d   : > { %v4747_v6 = vpop.f32.mrb[24].mxu1 }
 0x24e   : > { %v4748_v28 = vpop.f32.mrb[25].mxu1 }
 0x24f   : > { %v6221_v39 = vadd.f32 %v4748_v28, %v4747_v6  ;;  %v4750_v60 = vpop.f32.mrb[26].mxu1 }
 0x250   : > { %v4751_v38 = vpop.f32.mrb[27].mxu1 }
 0x251   : > { %v6223_v40 = vadd.f32 %v4751_v38, %v4750_v60 }
 0x255   : > { %v4753_v41 = vpop.f32.mrb[28].mxu1 }
 0x256   : > { %v4754_v43 = vpop.f32.mrb[29].mxu1 }
 0x257   : > { %v6225_v44 = vadd.f32 %v4754_v43, %v4753_v41  ;;  %v4756_v46 = vpop.f32.mrb[30].mxu1 }
 0x258   : > { %v4757_v51 = vpop.f32.mrb[31].mxu1 }
 0x259   : > { %v6230_v52 = vadd.f32 %v4757_v51, %v4756_v46 }
 0x25d   : > { %v4759_v56 = vpop.f32.mrb[32].mxu1 }
 0x25e   : > { %v4760_v57 = vpop.f32.mrb[33].mxu1 }
 0x25f   : > { %v6244_v1 = vadd.f32 %v4760_v57, %v4759_v56  ;;  %v4762_v18 = vpop.f32.mrb[34].mxu1 }
 0x260   : > { %v4763_v59 = vpop.f32.mrb[35].mxu1 }
 0x261   : > { %v6250_v62 = vadd.f32 %v4763_v59, %v4762_v18 }
 0x265   : > { %v4765_v0 = vpop.f32.mrb[36].mxu1 }
 0x266   : > { %v4766_v2 = vpop.f32.mrb[37].mxu1 }
 0x267   : > { %v6252_v3 = vadd.f32 %v4766_v2, %v4765_v0  ;;  %v4768_v19 = vpop.f32.mrb[38].mxu1 }
 0x268   : > { %v4769_v7 = vpop.f32.mrb[39].mxu1 }
 0x269   : > { %v6254_v9 = vadd.f32 %v4769_v7, %v4768_v19 }
 0x26d   : > { %v4771_v10 = vpop.f32.mrb[40].mxu1 }
 0x26e   : > { %v4772_v11 = vpop.f32.mrb[41].mxu1 }
 0x26f   : > { %v6256_v17 = vadd.f32 %v4772_v11, %v4771_v10  ;;  %v4774_v14 = vpop.f32.mrb[42].mxu1 }
 0x270   : > { %v4775_v12 = vpop.f32.mrb[43].mxu1 }
 0x271   : > { %v6258_v13 = vadd.f32 %v4775_v12, %v4774_v14 }
 0x273   : > { %v4875_v26 = vpop.f32.mrb[48].mxu0 }
 0x274   : > { %v4876_v15 = vpop.f32.mrb[49].mxu0 }
 0x275   : > { %v4877_v16 = vadd.f32 %v4876_v15, %v4875_v26  ;;  %v4878_v20 = vpop.f32.mrb[50].mxu0  ;;  %v4777_v22 = vpop.f32.mrb[44].mxu1 }
 0x276   : > { %v4879_v21 = vpop.f32.mrb[51].mxu0  ;;  %v4778_v42 = vpop.f32.mrb[45].mxu1 }
 0x277   : > { %v4880_v24 = vadd.f32 %v4879_v21, %v4878_v20  ;;  %v6260_v25 = vadd.f32 %v4778_v42, %v4777_v22  ;;  %v4780_v29 = vpop.f32.mrb[46].mxu1 }
 0x278   : > { %v4781_v31 = vpop.f32.mrb[47].mxu1 }
 0x279   : > { %v6262_v33 = vadd.f32 %v4781_v31, %v4780_v29 }
 0x27b   : > { %v4881_v34 = vpop.f32.mrb[52].mxu0 }
 0x27c   : > { %v4882_v35 = vpop.f32.mrb[53].mxu0 }
 0x27d   : > { %v4883_v48 = vadd.f32 %v4882_v35, %v4881_v34  ;;  %v4884_v37 = vpop.f32.mrb[54].mxu0  ;;  %v4783_v27 = vpop.f32.mrb[48].mxu1 }
 0x27e   : > { %v4885_v5 = vpop.f32.mrb[55].mxu0  ;;  %v4784_v47 = vpop.f32.mrb[49].mxu1 }
 0x27f   : > { %v4886_v30 = vadd.f32 %v4885_v5, %v4884_v37  ;;  %v6264_v50 = vadd.f32 %v4784_v47, %v4783_v27  ;;  %v4786_v4 = vpop.f32.mrb[50].mxu1 }
 0x280   : > { %v4787_v8 = vpop.f32.mrb[51].mxu1 }
 0x281   : > { %v6266_v32 = vadd.f32 %v4787_v8, %v4786_v4 }
 0x283   : > { %v4887_v36 = vpop.f32.mrb[56].mxu0 }
 0x284   : > { %v4888_v63 = vpop.f32.mrb[57].mxu0 }
 0x285   : > { %v4889_v6 = vadd.f32 %v4888_v63, %v4887_v36  ;;  %v4890_v23 = vpop.f32.mrb[58].mxu0  ;;  %v4789_v60 = vpop.f32.mrb[52].mxu1 }
 0x286   : > { %v4891_v28 = vpop.f32.mrb[59].mxu0  ;;  %v4790_v41 = vpop.f32.mrb[53].mxu1 }
 0x287   : > { %v4892_v38 = vadd.f32 %v4891_v28, %v4890_v23  ;;  %v6268_v43 = vadd.f32 %v4790_v41, %v4789_v60  ;;  %v4792_v46 = vpop.f32.mrb[54].mxu1 }
 0x288   : > { %v4793_v49 = vpop.f32.mrb[55].mxu1 }
 0x289   : > { %v6270_v51 = vadd.f32 %v4793_v49, %v4792_v46 }
 0x28b   : > { %v4893_v53 = vpop.f32.mrb[60].mxu0 }
 0x28c   : > { %v4894_v54 = vpop.f32.mrb[61].mxu0 }
 0x28d   : > { %v6272_v55 = vadd.f32 %v4894_v54, %v4893_v53  ;;  %v4896_v56 = vpop.f32.mrb[62].mxu0  ;;  %v4811_v57 = vpop.f32.mrb[56].mxu1 }
 0x28e   : > { %v4897_v45 = vpop.f32.mrb[63].mxu0  ;;  %v4812_v58 = vpop.f32.mrb[57].mxu1 }
 0x28f   : > { %v6274_v18 = vadd.f32 %v4897_v45, %v4896_v56  ;;  %v4813_v59 = vadd.f32 %v4812_v58, %v4811_v57  ;;  %v4814_v61 = vpop.f32.mrb[58].mxu1 }
 0x290   : > { %v4815_v0 = vpop.f32.mrb[59].mxu1 }
 0x291   : > { %v3225_v2 = vadd.f32 %v4813_v59, %v6221_v39  ;;  %v4816_v19 = vadd.f32 %v4815_v0, %v4814_v61 }
 0x293   : > { %v4899_v7 = vpop.f32.mrb[64].mxu0  ;;  %v3228_v11 = vadd.f32 %v4816_v19, %v6223_v40  ;;  %v6280_v26 = vadd.f32 %v4877_v16, %v3225_v2 }
 0x294   : > { %v4900_v10 = vpop.f32.mrb[65].mxu0 }
 0x295   : > { %v6278_v14 = vadd.f32 %v4900_v10, %v4899_v7  ;;  %v4902_v12 = vpop.f32.mrb[66].mxu0  ;;  %v4817_v20 = vpop.f32.mrb[60].mxu1  ;;  %v6284_v22 = vadd.f32 %v4880_v24, %v3228_v11 }
 0x296   : > { %v4903_v15 = vpop.f32.mrb[67].mxu0  ;;  %v4818_v42 = vpop.f32.mrb[61].mxu1 }
 0x297   : > { %v6282_v21 = vadd.f32 %v4903_v15, %v4902_v12  ;;  %v4819_v29 = vadd.f32 %v4818_v42, %v4817_v20  ;;  %v4820_v31 = vpop.f32.mrb[62].mxu1 }
 0x298   : > { %v4821_v39 = vpop.f32.mrb[63].mxu1 }
 0x299   : > { %v3233_v34 = vadd.f32 %v4819_v29, %v6225_v44  ;;  %v4822_v35 = vadd.f32 %v4821_v39, %v4820_v31 }
 0x29b   : > { %v4905_v37 = vpop.f32.mrb[68].mxu0  ;;  %v3236_v5 = vadd.f32 %v4822_v35, %v6230_v52  ;;  %v6290_v47 = vadd.f32 %v4883_v48, %v3233_v34 }
 0x29c   : > { %v4906_v40 = vpop.f32.mrb[69].mxu0 }
 0x29d   : > { %v6288_v27 = vadd.f32 %v4906_v40, %v4905_v37  ;;  %v4908_v16 = vpop.f32.mrb[70].mxu0  ;;  %v4823_v8 = vpop.f32.mrb[64].mxu1  ;;  %v6292_v36 = vadd.f32 %v4886_v30, %v3236_v5 }
 0x29e   : > { %v4909_v4 = vpop.f32.mrb[71].mxu0  ;;  %v4824_v63 = vpop.f32.mrb[65].mxu1 }
 0x29f   : > { %v4910_v24 = vadd.f32 %v4909_v4, %v4908_v16  ;;  %v4825_v23 = vadd.f32 %v4824_v63, %v4823_v8  ;;  %v4826_v28 = vpop.f32.mrb[66].mxu1 }
 0x2a0   : > { %v4827_v60 = vpop.f32.mrb[67].mxu1 }
 0x2a1   : > { %v3241_v44 = vadd.f32 %v4825_v23, %v6244_v1  ;;  %v4828_v41 = vadd.f32 %v4827_v60, %v4826_v28 }
 0x2a3   : > { %v4911_v46 = vpop.f32.mrb[72].mxu0  ;;  %v3244_v52 = vadd.f32 %v4828_v41, %v6250_v62  ;;  %v6296_v48 = vadd.f32 %v4889_v6, %v3241_v44 }
 0x2a4   : > { %v4912_v49 = vpop.f32.mrb[73].mxu0 }
 0x2a5   : > { %v4913_v53 = vadd.f32 %v4912_v49, %v4911_v46  ;;  %v4914_v54 = vpop.f32.mrb[74].mxu0  ;;  %v4829_v45 = vpop.f32.mrb[68].mxu1  ;;  %v6298_v30 = vadd.f32 %v4892_v38, %v3244_v52 }
 0x2a6   : > { %v4915_v56 = vpop.f32.mrb[75].mxu0  ;;  %v4830_v58 = vpop.f32.mrb[69].mxu1 }
 0x2a7   : > { %v4916_v57 = vadd.f32 %v4915_v56, %v4914_v54  ;;  %v4831_v59 = vadd.f32 %v4830_v58, %v4829_v45  ;;  %v4832_v61 = vpop.f32.mrb[70].mxu1 }
 0x2a8   : > { %v4833_v0 = vpop.f32.mrb[71].mxu1 }
 0x2a9   : > { %v3249_v1 = vadd.f32 %v4831_v59, %v6252_v3  ;;  %v4834_v2 = vadd.f32 %v4833_v0, %v4832_v61 }
 0x2ab   : > { %v4917_v19 = vpop.f32.mrb[76].mxu0  ;;  %v3252_v62 = vadd.f32 %v4834_v2, %v6254_v9  ;;  %v6303_v6 = vadd.f32 %v6272_v55, %v3249_v1 }
 0x2ac   : > { %v4918_v7 = vpop.f32.mrb[77].mxu0 }
 0x2ad   : > { %v4919_v10 = vadd.f32 %v4918_v7, %v4917_v19  ;;  %v4920_v11 = vpop.f32.mrb[78].mxu0  ;;  %v4835_v15 = vpop.f32.mrb[72].mxu1  ;;  %v6306_v20 = vadd.f32 %v6274_v18, %v3252_v62 }
 0x2ae   : > { %v4921_v12 = vpop.f32.mrb[79].mxu0  ;;  %v4836_v42 = vpop.f32.mrb[73].mxu1 }
 0x2af   : > { %v4922_v38 = vadd.f32 %v4921_v12, %v4920_v11  ;;  %v4837_v29 = vadd.f32 %v4836_v42, %v4835_v15  ;;  %v4838_v31 = vpop.f32.mrb[74].mxu1 }
 0x2b0   : > { %v4839_v3 = vpop.f32.mrb[75].mxu1 }
 0x2b1   : > { %v3257_v39 = vadd.f32 %v4837_v29, %v6256_v17  ;;  %v4840_v34 = vadd.f32 %v4839_v3, %v4838_v31 }
 0x2b3   : > { %v6309_v35 = vpop.f32.mrb[80].mxu0  ;;  %v3260_v37 = vadd.f32 %v4840_v34, %v6258_v13  ;;  %v6315_v40 = vadd.f32 %v6278_v14, %v3257_v39 }
 0x2b4   : > { %v3515_v9 = vpop.f32.mrb[81].mxu0 }
 0x2b5   : > { %v6312_v55 = vpop.f32.mrb[82].mxu0  ;;  %v4841_v18 = vpop.f32.mrb[76].mxu1  ;;  %v6318_v16 = vadd.f32 %v6282_v21, %v3260_v37 }
 0x2b6   : > { %v3518_v5 = vpop.f32.mrb[83].mxu0  ;;  %v4842_v4 = vpop.f32.mrb[77].mxu1 }
 0x2b7   : > { %v4843_v8 = vadd.f32 %v4842_v4, %v4841_v18  ;;  %v4844_v63 = vpop.f32.mrb[78].mxu1 }
 0x2b8   : > { %v4845_v17 = vpop.f32.mrb[79].mxu1 }
 0x2b9   : > { %v3265_v23 = vadd.f32 %v4843_v8, %v6260_v25  ;;  %v4846_v28 = vadd.f32 %v4845_v17, %v4844_v63 }
 0x2bb   : > { %v6321_v60 = vpop.f32.mrb[84].mxu0  ;;  %v3268_v44 = vadd.f32 %v4846_v28, %v6262_v33  ;;  %v6329_v41 = vadd.f32 %v6288_v27, %v3265_v23 }
 0x2bc   : > { %v6323_v13 = vpop.f32.mrb[85].mxu0 }
 0x2bd   : > { %v6326_v14 = vpop.f32.mrb[86].mxu0  ;;  %v4847_v46 = vpop.f32.mrb[80].mxu1  ;;  %v6333_v49 = vadd.f32 %v4910_v24, %v3268_v44 }
 0x2be   : > { %v6331_v21 = vpop.f32.mrb[87].mxu0  ;;  %v4848_v52 = vpop.f32.mrb[81].mxu1 }
 0x2bf   : > { %v4849_v54 = vadd.f32 %v4848_v52, %v4847_v46  ;;  %v4850_v25 = vpop.f32.mrb[82].mxu1 }
 0x2c0   : > { %v4851_v56 = vpop.f32.mrb[83].mxu1 }
 0x2c1   : > { %v3273_v45 = vadd.f32 %v4849_v54, %v6264_v50  ;;  %v4852_v58 = vadd.f32 %v4851_v56, %v4850_v25  ;;  %v5463_v56 = vld [vmem:[%s5774_s10 + $0xc8] sm:$0xff]  }
 0x2c3   : > { %v6336_v59 = vpop.f32.mrb[88].mxu0  ;;  %v3276_v61 = vadd.f32 %v4852_v58, %v6266_v32  ;;  %v6343_v0 = vadd.f32 %v4913_v53, %v3273_v45 }
 0x2c4   : > { %v6338_v33 = vpop.f32.mrb[89].mxu0 }
 0x2c5   : > { %v6341_v27 = vpop.f32.mrb[90].mxu0  ;;  %v4853_v24 = vpop.f32.mrb[84].mxu1  ;;  %v6347_v2 = vadd.f32 %v4916_v57, %v3276_v61 }
 0x2c6   : > { %v6345_v1 = vpop.f32.mrb[91].mxu0  ;;  %v4854_v19 = vpop.f32.mrb[85].mxu1 }
 0x2c7   : > { %v4855_v7 = vadd.f32 %v4854_v19, %v4853_v24  ;;  %v4856_v62 = vpop.f32.mrb[86].mxu1 }
 0x2c8   : > { %v4857_v50 = vpop.f32.mrb[87].mxu1 }
 0x2c9   : > { %v3281_v11 = vadd.f32 %v4855_v7, %v6268_v43  ;;  %v4858_v12 = vadd.f32 %v4857_v50, %v4856_v62 }
 0x2cb   : > { %v6350_v15 = vpop.f32.mrb[92].mxu0  ;;  %v3284_v32 = vadd.f32 %v4858_v12, %v6270_v51  ;;  %v6357_v29 = vadd.f32 %v4919_v10, %v3281_v11 }
 0x2cc   : > { %v6352_v42 = vpop.f32.mrb[93].mxu0 }
 0x2cd   : > { %v6355_v53 = vpop.f32.mrb[94].mxu0  ;;  %v4939_v57 = vpop.f32.mrb[88].mxu1  ;;  %v6361_v3 = vadd.f32 %v4922_v38, %v3284_v32 }
 0x2ce   : > { %v6359_v31 = vpop.f32.mrb[95].mxu0  ;;  %v4940_v39 = vpop.f32.mrb[89].mxu1 }
 0x2cf   : > { %v4941_v34 = vadd.f32 %v4940_v39, %v4939_v57  ;;  %v4942_v37 = vpop.f32.mrb[90].mxu1 }
 0x2d0   : > { %v4943_v43 = vpop.f32.mrb[91].mxu1 }
 0x2d1   : > { %v3419_v18 = vadd.f32 %v4941_v34, %v6280_v26  ;;  %v4944_v4 = vadd.f32 %v4943_v43, %v4942_v37 }
 0x2d3   : > { %v3516_v8 = vadd.f32 %v3515_v9, %v3419_v18  ;;  %v3422_v51 = vadd.f32 %v4944_v4, %v6284_v22 }
 0x2d5   : > { %v3594_v63 = vmul.f32 0.1, %v3516_v8  ;;  %v3519_v17 = vadd.f32 %v3518_v5, %v3422_v51  ;;  %v4945_v10 = vpop.f32.mrb[92].mxu1  ;;  %vm3578_vm7 = vcmp.ge.f32.partialorder %v3516_v8, 0.0 }
 0x2d6   : > { %v4946_v23 = vpop.f32.mrb[93].mxu1 }
 0x2d7   : > { %vm3579_vm8 = vcmp.ge.f32.partialorder %v3519_v17, 0.0  ;;  %v3595_v28 = vmul.f32 0.1, %v3519_v17  ;;  %v4947_v38 = vadd.f32 %v4946_v23, %v4945_v10  ;;  %v4948_v44 = vpop.f32.mrb[94].mxu1  ;;  %v3610_v52 = vsel %vm3578_vm7, %v3516_v8, %v3594_v63 }
 0x2d8   : > { %v4949_v46 = vpop.f32.mrb[95].mxu1 }
 0x2d9   : > { %v3611_v54 = vsel %vm3579_vm8, %v3519_v17, %v3595_v28  ;;  %v3427_v25 = vadd.f32 %v4947_v38, %v6290_v47  ;;  %v4950_v26 = vadd.f32 %v4949_v46, %v4948_v44 }
 0x2da   : > { %v3626_v9 = vpack.c.bf16 %v3611_v54, %v3610_v52 }
 0x2db   : > { %v3524_v45 = vadd.f32 %v6309_v35, %v3427_v25  ;;  %v3430_v22 = vadd.f32 %v4950_v26, %v6292_v36  ;;  %v5464_v36 = vld [vmem:[%s5774_s10 + $0xd0] sm:$0xff]  }
 0x2dc   : > { %3860 = vmatmul.mubr.bf16.vlgmr.msra.gmra.mrb[96].mxu0 %v3626_v9 }
 0x2dd   : > { %v3596_v5 = vmul.f32 0.1, %v3524_v45  ;;  %v3527_v58 = vadd.f32 %v6312_v55, %v3430_v22  ;;  %v4951_v61 = vpop.f32.mrb[96].mxu1  ;;  %3866 = vmatprep.mubr.bf16.mxu0 %v5463_v56  ;;  %vm3580_vm9 = vcmp.ge.f32.partialorder %v3524_v45, 0.0 }
 0x2de   : > { %v4952_v24 = vpop.f32.mrb[97].mxu1 }
 0x2df   : > { %v3597_v19 = vmul.f32 0.1, %v3527_v58  ;;  %v4953_v7 = vadd.f32 %v4952_v24, %v4951_v61  ;;  %v4954_v62 = vpop.f32.mrb[98].mxu1  ;;  %vm3581_vm10 = vcmp.ge.f32.partialorder %v3527_v58, 0.0  ;;  %v3612_v35 = vsel %vm3580_vm9, %v3524_v45, %v3596_v5 }
 0x2e0   : > { %v4955_v47 = vpop.f32.mrb[99].mxu1 }
 0x2e1   : > { %v3435_v50 = vadd.f32 %v4953_v7, %v6296_v48  ;;  %v4956_v11 = vadd.f32 %v4955_v47, %v4954_v62  ;;  %v3613_v12 = vsel %vm3581_vm10, %v3527_v58, %v3597_v19 }
 0x2e2   : > { %v3627_v32 = vpack.c.bf16 %v3613_v12, %v3612_v35 }
 0x2e3   : > { %v3532_v57 = vadd.f32 %v6323_v13, %v3435_v50  ;;  %v3438_v55 = vadd.f32 %v4956_v11, %v6298_v30  ;;  %v5465_v30 = vld [vmem:[%s5774_s10 + $0xd8] sm:$0xff]  }
 0x2e4   : > { %3867 = vmatmul.mubr.bf16.gmra.mrb[100].mxu0 %v3627_v32 }
 0x2e5   : > { %v3598_v39 = vmul.f32 0.1, %v3532_v57  ;;  %v3535_v34 = vadd.f32 %v6331_v21, %v3438_v55  ;;  %v4957_v37 = vpop.f32.mrb[100].mxu1  ;;  %3873 = vmatprep.mubr.bf16.mxu0 %v5464_v36  ;;  %vm3582_vm11 = vcmp.ge.f32.partialorder %v3532_v57, 0.0 }
 0x2e6   : > { %v4958_v43 = vpop.f32.mrb[101].mxu1 }
 0x2e7   : > { %v3599_v18 = vmul.f32 0.1, %v3535_v34  ;;  %v4959_v48 = vadd.f32 %v4958_v43, %v4957_v37  ;;  %v4960_v4 = vpop.f32.mrb[102].mxu1  ;;  %vm3583_vm12 = vcmp.ge.f32.partialorder %v3535_v34, 0.0  ;;  %v3614_v13 = vsel %vm3582_vm11, %v3532_v57, %v3598_v39 }
 0x2e8   : > { %v4961_v8 = vpop.f32.mrb[103].mxu1 }
 0x2e9   : > { %v3443_v51 = vadd.f32 %v4959_v48, %v6303_v6  ;;  %v4962_v63 = vadd.f32 %v4961_v8, %v4960_v4  ;;  %v3615_v17 = vsel %vm3583_vm12, %v3535_v34, %v3599_v18 }
 0x2ea   : > { %v3628_v10 = vpack.c.bf16 %v3615_v17, %v3614_v13 }
 0x2eb   : > { %v3540_v23 = vadd.f32 %v6321_v60, %v3443_v51  ;;  %v3446_v21 = vadd.f32 %v4962_v63, %v6306_v20  ;;  %v5466_v20 = vld [vmem:[%s5774_s10 + $0xe0] sm:$0xff]  }
 0x2ec   : > { %3874 = vmatmul.mubr.bf16.gmra.mrb[104].mxu0 %v3628_v10 }
 0x2ed   : > { %v3600_v28 = vmul.f32 0.1, %v3540_v23  ;;  %v3543_v38 = vadd.f32 %v6326_v14, %v3446_v21  ;;  %v4963_v44 = vpop.f32.mrb[104].mxu1  ;;  %3880 = vmatprep.mubr.bf16.mxu0 %v5465_v30  ;;  %vm3584_vm13 = vcmp.ge.f32.partialorder %v3540_v23, 0.0 }
 0x2ee   : > { %v4964_v46 = vpop.f32.mrb[105].mxu1 }
 0x2ef   : > { %v3601_v52 = vmul.f32 0.1, %v3543_v38  ;;  %v4965_v6 = vadd.f32 %v4964_v46, %v4963_v44  ;;  %v4966_v54 = vpop.f32.mrb[106].mxu1  ;;  %vm3585_vm14 = vcmp.ge.f32.partialorder %v3543_v38, 0.0  ;;  %v3616_v60 = vsel %vm3584_vm13, %v3540_v23, %v3600_v28 }
 0x2f0   : > { %v4967_v25 = vpop.f32.mrb[107].mxu1 }
 0x2f1   : > { %v3451_v26 = vadd.f32 %v4965_v6, %v6315_v40  ;;  %v4968_v56 = vadd.f32 %v4967_v25, %v4966_v54  ;;  %v3617_v9 = vsel %vm3585_vm14, %v3543_v38, %v3601_v52 }
 0x2f2   : > { %v3629_v45 = vpack.c.bf16 %v3617_v9, %v3616_v60 }
 0x2f3   : > { %v3548_v22 = vadd.f32 %v6338_v33, %v3451_v26  ;;  %v3454_v14 = vadd.f32 %v4968_v56, %v6318_v16  ;;  %v5467_v16 = vld [vmem:[%s5774_s10 + $0xe8] sm:$0xff]  }
 0x2f4   : > { %3881 = vmatmul.mubr.bf16.gmra.mrb[108].mxu0 %v3629_v45 }
 0x2f5   : > { %v3602_v5 = vmul.f32 0.1, %v3548_v22  ;;  %v3551_v58 = vadd.f32 %v6345_v1, %v3454_v14  ;;  %v4969_v61 = vpop.f32.mrb[108].mxu1  ;;  %3887 = vmatprep.mubr.bf16.mxu0 %v5466_v20  ;;  %vm3586_vm15 = vcmp.ge.f32.partialorder %v3548_v22, 0.0 }
 0x2f6   : > { %v4970_v24 = vpop.f32.mrb[109].mxu1 }
 0x2f7   : > { %v3603_v19 = vmul.f32 0.1, %v3551_v58  ;;  %v4971_v40 = vadd.f32 %v4970_v24, %v4969_v61  ;;  %v4972_v7 = vpop.f32.mrb[110].mxu1  ;;  %vm3587_vm0 = vcmp.ge.f32.partialorder %v3551_v58, 0.0  ;;  %v3618_v33 = vsel %vm3586_vm15, %v3548_v22, %v3602_v5 }
 0x2f8   : > { %v4973_v62 = vpop.f32.mrb[111].mxu1 }
 0x2f9   : > { %v3459_v47 = vadd.f32 %v4971_v40, %v6329_v41  ;;  %v4974_v50 = vadd.f32 %v4973_v62, %v4972_v7  ;;  %v3619_v11 = vsel %vm3587_vm0, %v3551_v58, %v3603_v19 }
 0x2fa   : > { %v3630_v35 = vpack.c.bf16 %v3619_v11, %v3618_v33 }
 0x2fb   : > { %v3556_v12 = vadd.f32 %v6336_v59, %v3459_v47  ;;  %v3462_v1 = vadd.f32 %v4974_v50, %v6333_v49  ;;  %v5468_v49 = vld [vmem:[%s5774_s10 + $0xf0] sm:$0xff]  }
 0x2fc   : > { %3888 = vmatmul.mubr.bf16.gmra.mrb[112].mxu0 %v3630_v35 }
 0x2fd   : > { %v3604_v36 = vmul.f32 0.1, %v3556_v12  ;;  %v3559_v32 = vadd.f32 %v6341_v27, %v3462_v1  ;;  %v4975_v57 = vpop.f32.mrb[112].mxu1  ;;  %3894 = vmatprep.mubr.bf16.mxu0 %v5467_v16  ;;  %vm3588_vm1 = vcmp.ge.f32.partialorder %v3556_v12, 0.0 }
 0x2fe   : > { %v4976_v55 = vpop.f32.mrb[113].mxu1 }
 0x2ff   : > { %v3605_v39 = vmul.f32 0.1, %v3559_v32  ;;  %v4977_v41 = vadd.f32 %v4976_v55, %v4975_v57  ;;  %v4978_v34 = vpop.f32.mrb[114].mxu1  ;;  %vm3589_vm2 = vcmp.ge.f32.partialorder %v3559_v32, 0.0  ;;  %v3620_v59 = vsel %vm3588_vm1, %v3556_v12, %v3604_v36 }
 0x300   : > { %v4979_v37 = vpop.f32.mrb[115].mxu1 }
 0x301   : > { %v3467_v43 = vadd.f32 %v4977_v41, %v6343_v0  ;;  %v4980_v18 = vadd.f32 %v4979_v37, %v4978_v34  ;;  %v3621_v48 = vsel %vm3589_vm2, %v3559_v32, %v3605_v39 }
 0x302   : > { %v3631_v4 = vpack.c.bf16 %v3621_v48, %v3620_v59 }
 0x303   : > { %v3564_v8 = vadd.f32 %v6352_v42, %v3467_v43  ;;  %v3470_v27 = vadd.f32 %v4980_v18, %v6347_v2  ;;  %v5469_v2 = vld [vmem:[%s5774_s10 + $0xf8] sm:$0xff]   ;;  %s4416_s10 = sshll.u32 %s6444_s20, 6 }
 0x304   : > { %3895 = vmatmul.mubr.bf16.gmra.mrb[116].mxu0 %v3631_v4  ;;  %s6405_s25 = scalar_lea.vmem %s6435_s5, %s4416_s10 }
 0x305   : > { %v3606_v51 = vmul.f32 0.1, %v3564_v8  ;;  %v3567_v63 = vadd.f32 %v6359_v31, %v3470_v27  ;;  %v4981_v13 = vpop.f32.mrb[116].mxu1  ;;  %3901 = vmatprep.mubr.bf16.mxu0 %v5468_v49  ;;  %vm3590_vm3 = vcmp.ge.f32.partialorder %v3564_v8, 0.0 }
 0x306   : > { %v4982_v17 = vpop.f32.mrb[117].mxu1 }
 0x307   : > { %v3607_v30 = vmul.f32 0.1, %v3567_v63  ;;  %v4983_v0 = vadd.f32 %v4982_v17, %v4981_v13  ;;  %v4984_v10 = vpop.f32.mrb[118].mxu1  ;;  %vm3591_vm4 = vcmp.ge.f32.partialorder %v3567_v63, 0.0  ;;  %v3622_v42 = vsel %vm3590_vm3, %v3564_v8, %v3606_v51 }
 0x308   : > { %v4985_v23 = vpop.f32.mrb[119].mxu1 }
 0x309   : > { %v3475_v21 = vadd.f32 %v4983_v0, %v6357_v29  ;;  %v4986_v28 = vadd.f32 %v4985_v23, %v4984_v10  ;;  %v3623_v38 = vsel %vm3591_vm4, %v3567_v63, %v3607_v30 }
 0x30a   : > { %v3632_v44 = vpack.c.bf16 %v3623_v38, %v3622_v42 }
 0x30b   : > { %v3572_v31 = vadd.f32 %v6350_v15, %v3475_v21  ;;  %v3478_v46 = vadd.f32 %v4986_v28, %v6361_v3 }
 0x30c   : > { %3902 = vmatmul.mubr.bf16.gmra.mrb[120].mxu0 %v3632_v44 }
 0x30d   : > { %v3608_v52 = vmul.f32 0.1, %v3572_v31  ;;  %v3575_v6 = vadd.f32 %v6355_v53, %v3478_v46  ;;  %3908 = vmatprep.mubr.bf16.mxu0 %v5469_v2  ;;  %vm3592_vm5 = vcmp.ge.f32.partialorder %v3572_v31, 0.0 }
 0x30f   : > { %v3609_v54 = vmul.f32 0.1, %v3575_v6  ;;  %vm3593_vm6 = vcmp.ge.f32.partialorder %v3575_v6, 0.0  ;;  %v3624_v29 = vsel %vm3592_vm5, %v3572_v31, %v3608_v52 }
 0x311   : > { %v3625_v25 = vsel %vm3593_vm6, %v3575_v6, %v3609_v54 }
 0x312   : > { %v3633_v26 = vpack.c.bf16 %v3625_v25, %v3624_v29 }
 0x314   : > { %3909 = vmatmul.mubr.bf16.gmra.mrb[124].mxu0 %v3633_v26 }
 0x3af   : > { %v5019_v56 = vpop.f32.mrb[96].mxu0 }
 0x3b0   : > { %v5020_v60 = vpop.f32.mrb[97].mxu0 }
 0x3b1   : > { %v5021_v15 = vadd.f32 %v5020_v60, %v5019_v56  ;;  %v5022_v9 = vpop.f32.mrb[98].mxu0 }
 0x3b2   : > { %v5023_v3 = vpop.f32.mrb[99].mxu0 }
 0x3b3   : > { %vm3916_vm7 = vcmp.ge.f32.partialorder %v5021_v15, 0.0  ;;  %v3924_v53 = vmul.f32 0.1, %v5021_v15 }
 0x3b5   : > { %v3932_v20 = vsel %vm3916_vm7, %v5021_v15, %v3924_v53 }
 0x3b6   : > { %3940 = vst [vmem:[%s6405_s25] sm:$0xff] %v3932_v20 }
 0x3b7   : > { %v5025_v45 = vpop.f32.mrb[100].mxu0 }
 0x3b8   : > { %v5026_v22 = vpop.f32.mrb[101].mxu0 }
 0x3b9   : > { %v5027_v14 = vadd.f32 %v5026_v22, %v5025_v45  ;;  %v5028_v5 = vpop.f32.mrb[102].mxu0 }
 0x3ba   : > { %v5029_v58 = vpop.f32.mrb[103].mxu0 }
 0x3bb   : > { %vm3917_vm8 = vcmp.ge.f32.partialorder %v5027_v14, 0.0  ;;  %v3925_v61 = vmul.f32 0.1, %v5027_v14 }
 0x3bd   : > { %v3933_v24 = vsel %vm3917_vm8, %v5027_v14, %v3925_v61 }
 0x3be   : > { %3941 = vst [vmem:[%s6405_s25 + $0x8] sm:$0xff] %v3933_v24 }
 0x3bf   : > { %v5031_v19 = vpop.f32.mrb[104].mxu0 }
 0x3c0   : > { %v5032_v40 = vpop.f32.mrb[105].mxu0 }
 0x3c1   : > { %v5033_v7 = vadd.f32 %v5032_v40, %v5031_v19  ;;  %v5034_v62 = vpop.f32.mrb[106].mxu0 }
 0x3c2   : > { %v5035_v47 = vpop.f32.mrb[107].mxu0 }
 0x3c3   : > { %vm3918_vm9 = vcmp.ge.f32.partialorder %v5033_v7, 0.0  ;;  %v3926_v50 = vmul.f32 0.1, %v5033_v7 }
 0x3c5   : > { %v3934_v33 = vsel %vm3918_vm9, %v5033_v7, %v3926_v50 }
 0x3c6   : > { %3942 = vst [vmem:[%s6405_s25 + $0x10] sm:$0xff] %v3934_v33 }
 0x3c7   : > { %v5037_v11 = vpop.f32.mrb[108].mxu0 }
 0x3c8   : > { %v5038_v16 = vpop.f32.mrb[109].mxu0 }
 0x3c9   : > { %v5039_v35 = vadd.f32 %v5038_v16, %v5037_v11  ;;  %v5040_v12 = vpop.f32.mrb[110].mxu0 }
 0x3ca   : > { %v5041_v1 = vpop.f32.mrb[111].mxu0 }
 0x3cb   : > { %vm3919_vm10 = vcmp.ge.f32.partialorder %v5039_v35, 0.0  ;;  %v3927_v36 = vmul.f32 0.1, %v5039_v35 }
 0x3cd   : > { %v3935_v32 = vsel %vm3919_vm10, %v5039_v35, %v3927_v36 }
 0x3ce   : > { %3943 = vst [vmem:[%s6405_s25 + $0x18] sm:$0xff] %v3935_v32 }
 0x3cf   : > { %v5043_v57 = vpop.f32.mrb[112].mxu0 }
 0x3d0   : > { %v5044_v55 = vpop.f32.mrb[113].mxu0 }
 0x3d1   : > { %v5045_v39 = vadd.f32 %v5044_v55, %v5043_v57  ;;  %v5046_v41 = vpop.f32.mrb[114].mxu0 }
 0x3d2   : > { %v5047_v34 = vpop.f32.mrb[115].mxu0 }
 0x3d3   : > { %vm3920_vm11 = vcmp.ge.f32.partialorder %v5045_v39, 0.0  ;;  %v3928_v37 = vmul.f32 0.1, %v5045_v39 }
 0x3d5   : > { %v3936_v43 = vsel %vm3920_vm11, %v5045_v39, %v3928_v37 }
 0x3d6   : > { %3944 = vst [vmem:[%s6405_s25 + $0x20] sm:$0xff] %v3936_v43 }
 0x3d7   : > { %v5049_v18 = vpop.f32.mrb[116].mxu0 }
 0x3d8   : > { %v5050_v59 = vpop.f32.mrb[117].mxu0 }
 0x3d9   : > { %v5051_v48 = vadd.f32 %v5050_v59, %v5049_v18  ;;  %v5052_v49 = vpop.f32.mrb[118].mxu0 }
 0x3da   : > { %v5053_v4 = vpop.f32.mrb[119].mxu0 }
 0x3db   : > { %vm3921_vm12 = vcmp.ge.f32.partialorder %v5051_v48, 0.0  ;;  %v3929_v8 = vmul.f32 0.1, %v5051_v48 }
 0x3dd   : > { %v3937_v27 = vsel %vm3921_vm12, %v5051_v48, %v3929_v8 }
 0x3de   : > { %3945 = vst [vmem:[%s6405_s25 + $0x28] sm:$0xff] %v3937_v27 }
 0x3df   : > { %v5055_v51 = vpop.f32.mrb[120].mxu0 }
 0x3e0   : > { %v5056_v63 = vpop.f32.mrb[121].mxu0 }
 0x3e1   : > { %v5057_v13 = vadd.f32 %v5056_v63, %v5055_v51  ;;  %v5058_v17 = vpop.f32.mrb[122].mxu0 }
 0x3e2   : > { %v5059_v30 = vpop.f32.mrb[123].mxu0 }
 0x3e3   : > { %vm3922_vm13 = vcmp.ge.f32.partialorder %v5057_v13, 0.0  ;;  %v3930_v0 = vmul.f32 0.1, %v5057_v13 }
 0x3e5   : > { %v3938_v10 = vsel %vm3922_vm13, %v5057_v13, %v3930_v0 }
 0x3e6   : > { %3946 = vst [vmem:[%s6405_s25 + $0x30] sm:$0xff] %v3938_v10 }
 0x3e7   : > { %v5061_v23 = vpop.f32.mrb[124].mxu0 }
 0x3e8   : > { %v5062_v21 = vpop.f32.mrb[125].mxu0 }
 0x3e9   : > { %v5063_v28 = vadd.f32 %v5062_v21, %v5061_v23  ;;  %v5064_v42 = vpop.f32.mrb[126].mxu0 }
 0x3ea   : > { %v5065_v38 = vpop.f32.mrb[127].mxu0 }
 0x3eb   : > { %vm3923_vm14 = vcmp.ge.f32.partialorder %v5063_v28, 0.0  ;;  %v3931_v2 = vmul.f32 0.1, %v5063_v28 }
 0x3ed   : > { %v3939_v44 = vsel %vm3923_vm14, %v5063_v28, %v3931_v2 }
 0x3ee   : > { %3947 = vst [vmem:[%s6405_s25 + $0x38] sm:$0xff] %v3939_v44 }
 0x3ef PF: > { %s15_s22 = sadd.s32 1, %s5524_s22   ;;  %s6437_s18 = smov %s5512_s19 }
 0x3f0   : > { %p12_p11 = scmp.ge.s32.totalorder %s15_s22, 4   ;;  %s6438_s19 = smov %s5600_s27 }
 0x3f1   : > { %s6439_s20 = smov %s5520_s21  ;;  %s6440_s21 = smov %s6442_s23 }
 0x3f2   :  { %14 = sbr.rel (!%p12_p11) target bundleno = 3 (0x3), region = 226 }

</bundles_post_ra>
